<compile_context>
chip_gen: v7x
topology: tpu7x:2x2x1
jax: 0.10.0
libtpu: 0.0.40
codegen_flags: <defaults>
</compile_context>

<pallas_src>
import functools

import jax
import jax.numpy as jnp
from jax.experimental import pallas as pl
from jax.experimental.pallas import tpu as pltpu

# ----------------------------- model dims -----------------------------------
VOCAB = 128      # synthetic vocab (bert-base is 30522; scaled down)
D = 32           # hidden size
H = 2            # attention heads
HD = D // H      # head dim
FFN = 64         # intermediate size
MAX_POS = 32     # max positions for positional embeddings
LN_EPS = 1e-12   # BERT layernorm eps

# ------------------------- packed parameter layout ---------------------------
# bf16 slab: every matrix that feeds the MXU (embeddings, weights, LM head).
_W_SPECS = [
    ("enc_tok_emb", (VOCAB, D)),
    ("enc_pos_emb", (MAX_POS, D)),
    ("dec_tok_emb", (VOCAB, D)),
    ("dec_pos_emb", (MAX_POS, D)),
    ("e_wqkv", (D, 3 * D)),
    ("e_wo", (D, D)),
    ("e_w1", (D, FFN)),
    ("e_w2", (FFN, D)),
    ("d_wqkv", (D, 3 * D)),
    ("d_wo", (D, D)),
    ("c_wq", (D, D)),
    ("c_wkv", (D, 2 * D)),
    ("c_wo", (D, D)),
    ("d_w1", (D, FFN)),
    ("d_w2", (FFN, D)),
    ("lm_w", (D, VOCAB)),
]

# f32 slab: biases + LayerNorm gamma/beta (VPU elementwise operands).
_B_SPECS = [
    ("ln_g", (8, D)),
    ("ln_b", (8, D)),
    ("e_bqkv", (1, 3 * D)),
    ("e_bo", (1, D)),
    ("e_b1", (1, FFN)),
    ("e_b2", (1, D)),
    ("d_bqkv", (1, 3 * D)),
    ("d_bo", (1, D)),
    ("c_bq", (1, D)),
    ("c_bkv", (1, 2 * D)),
    ("c_bo", (1, D)),
    ("d_b1", (1, FFN)),
    ("d_b2", (1, D)),
]


def _build_layout(specs, align):
    layout, off = {}, 0
    for name, (rows, cols) in specs:
        layout[name] = (off, rows, cols)
        off += -(-rows // align) * align          # keep slices tile-aligned
    return layout, off


_W_LAYOUT, _W_ROWS = _build_layout(_W_SPECS, 16)   # bf16 sublane tile = 16
_B_LAYOUT, _B_ROWS = _build_layout(_B_SPECS, 8)    # f32 sublane tile = 8

# LayerNorm row indices inside the packed (8, D) gamma/beta tables.
_LN_ENC_EMB, _LN_ENC_ATTN, _LN_ENC_FFN = 0, 1, 2
_LN_DEC_EMB, _LN_DEC_ATTN, _LN_DEC_XATTN, _LN_DEC_FFN = 3, 4, 5, 6


# ----------------------------- fused Pallas kernel ---------------------------
def _forward_kernel(ids_ref, w_ref, b_ref, loss_ref, *, Se, Sd):
    """One grid step = one sequence: encoder + decoder + CE sum, VMEM resident."""
    ids = ids_ref[0]                     # (Smax, 3) int32: [enc | dec_in | dec_tar]
    enc_ids = ids[:Se, 0:1]              # (Se, 1)
    dec_ids = ids[:Sd, 1:2]              # (Sd, 1)
    labels = ids[:Sd, 2:3]               # (Sd, 1)

    def wmat(name):                      # bf16 weight slice
        off, r, c = _W_LAYOUT[name]
        return w_ref[off:off + r, :c]

    def brow(name):                      # f32 bias / LN slice
        off, r, c = _B_LAYOUT[name]
        return b_ref[off:off + r, :c]

    ln_g = brow("ln_g")                  # (8, D)
    ln_b = brow("ln_b")                  # (8, D)

    def layernorm(x, idx):
        mu = jnp.mean(x, axis=-1, keepdims=True)
        var = jnp.mean(jnp.square(x - mu), axis=-1, keepdims=True)
        xn = (x - mu) * jax.lax.rsqrt(var + LN_EPS)
        return xn * ln_g[idx:idx + 1] + ln_b[idx:idx + 1]

    def dense(x, w_name, b_name, act=None):
        y = jnp.dot(x.astype(jnp.bfloat16), wmat(w_name),
                    preferred_element_type=jnp.float32) + brow(b_name)
        if act == "gelu":
            # TODO(synk): HF BERT uses exact erf GELU; tanh approximation used here.
            y = jax.nn.gelu(y, approximate=True)
        return y

    def embed(id_col, tok_name, pos_name, ln_idx, seq):
        # One-hot token lookup stays on the MXU with a lane-dense (seq, 128) operand.
        oh = (jax.lax.broadcasted_iota(jnp.int32, (seq, VOCAB), 1) == id_col
              ).astype(jnp.bfloat16)
        x = jnp.dot(oh, wmat(tok_name), preferred_element_type=jnp.float32)
        # Positions within the block are simply 0..seq-1 -> direct row slice.
        pos_off = _W_LAYOUT[pos_name][0]
        x = x + w_ref[pos_off:pos_off + seq, :D].astype(jnp.float32)
        return layernorm(x, ln_idx)

    def mha(q, k, v, sq, sk, causal):
        # q: (sq, D); k, v: (sk, D).  Heads split via static lane slices (H=2);
        # the batch dimension is handled by the pallas grid.
        scale = 1.0 / (HD ** 0.5)
        if causal:
            ri = jax.lax.broadcasted_iota(jnp.int32, (sq, sk), 0)
            ci = jax.lax.broadcasted_iota(jnp.int32, (sq, sk), 1)
            mask = ri >= ci
        heads = []
        for h in range(H):
            sl = slice(h * HD, (h + 1) * HD)
            s = jnp.dot(q[:, sl], k[:, sl].T,
                        preferred_element_type=jnp.float32) * scale
            if causal:
                s = jnp.where(mask, s, -1e9)
            s = s - jnp.max(s, axis=-1, keepdims=True)
            e = jnp.exp(s)
            p = e * pl.reciprocal(jnp.sum(e, axis=-1, keepdims=True), approx=True)
            heads.append(jnp.dot(p, v[:, sl], preferred_element_type=jnp.float32))
        return jnp.concatenate(heads, axis=-1)

    # ---------------- encoder (1 layer) ----------------
    xe = embed(enc_ids, "enc_tok_emb", "enc_pos_emb", _LN_ENC_EMB, Se)
    qkv = dense(xe, "e_wqkv", "e_bqkv")                        # fused Q/K/V [D, 3D]
    a = mha(qkv[:, :D], qkv[:, D:2 * D], qkv[:, 2 * D:], Se, Se, causal=False)
    xe = layernorm(xe + dense(a, "e_wo", "e_bo"), _LN_ENC_ATTN)
    f = dense(dense(xe, "e_w1", "e_b1", act="gelu"), "e_w2", "e_b2")
    xe = layernorm(xe + f, _LN_ENC_FFN)

    # ---------------- decoder (1 layer) ----------------
    xd = embed(dec_ids, "dec_tok_emb", "dec_pos_emb", _LN_DEC_EMB, Sd)
    qkv = dense(xd, "d_wqkv", "d_bqkv")                        # fused Q/K/V
    a = mha(qkv[:, :D], qkv[:, D:2 * D], qkv[:, 2 * D:], Sd, Sd, causal=True)
    xd = layernorm(xd + dense(a, "d_wo", "d_bo"), _LN_DEC_ATTN)

    q = dense(xd, "c_wq", "c_bq")
    kv = dense(xe, "c_wkv", "c_bkv")                           # fused cross K/V [D, 2D]
    a = mha(q, kv[:, :D], kv[:, D:], Sd, Se, causal=False)
    xd = layernorm(xd + dense(a, "c_wo", "c_bo"), _LN_DEC_XATTN)

    f = dense(dense(xd, "d_w1", "d_b1", act="gelu"), "d_w2", "d_b2")
    xd = layernorm(xd + f, _LN_DEC_FFN)

    # ---------------- LM head + token-level cross entropy ----------------
    logits = jnp.dot(xd.astype(jnp.bfloat16), wmat("lm_w"),
                     preferred_element_type=jnp.float32)       # (Sd, V)
    mx = jnp.max(logits, axis=-1, keepdims=True)
    lse = jnp.log(jnp.sum(jnp.exp(logits - mx), axis=-1, keepdims=True)) + mx
    oh = (jax.lax.broadcasted_iota(jnp.int32, (Sd, VOCAB), 1) == labels
          ).astype(jnp.float32)
    tgt = jnp.sum(logits * oh, axis=-1, keepdims=True)
    # TODO(synk): HF BertLMHeadModel applies an internal label shift and CE
    # ignore_index=-100 for padding; plain mean CE over all positions here.
    ce_sum = jnp.sum(lse - tgt)                                # per-sequence CE sum
    loss_ref[...] = jnp.full((1, 1, 128), ce_sum, dtype=jnp.float32)


# ----------------------------- model wrapper ----------------------------------
@jax.jit
def bert_encdec_loss(w_slab, b_slab, enc_ids, dec_ids):
    """Mirrors BERTEncDecModel.forward: shift decoder ids, run enc-dec, CE loss."""
    B, Se = enc_ids.shape
    dec_in = dec_ids[:, :-1]                                  # output_ids[:, :-1]
    dec_in = dec_in - (dec_in == 2).astype(dec_ids.dtype)     # -= (== 2)
    dec_tar = dec_ids[:, 1:]                                  # output_ids[:, 1:]
    Sd = dec_in.shape[1]
    if Se > MAX_POS or Sd > MAX_POS:
        raise ValueError("sequence length exceeds MAX_POS")
    Smax = max(Se, Sd)

    def pad_cols(x):
        return jnp.pad(x, ((0, 0), (0, Smax - x.shape[1])))

    # One int32 slab per batch row: columns = [enc_ids, dec_in, dec_tar].
    ids = jnp.stack(
        [pad_cols(enc_ids), pad_cols(dec_in), pad_cols(dec_tar)], axis=-1
    ).astype(jnp.int32)                                        # (B, Smax, 3)

    loss_parts = pl.pallas_call(
        functools.partial(_forward_kernel, Se=Se, Sd=Sd),
        out_shape=jax.ShapeDtypeStruct((B, 1, 128), jnp.float32),
        grid_spec=pltpu.PrefetchScalarGridSpec(
            num_scalar_prefetch=0,
            grid=(B,),
            in_specs=[
                pl.BlockSpec((1, Smax, 3), lambda b: (b, 0, 0)),   # per-batch ids
                pl.BlockSpec((_W_ROWS, 128), lambda b: (0, 0)),    # bf16 weight slab
                pl.BlockSpec((_B_ROWS, 128), lambda b: (0, 0)),    # f32 bias/LN slab
            ],
            out_specs=pl.BlockSpec((1, 1, 128), lambda b: (b, 0, 0)),
        ),
        compiler_params=pltpu.CompilerParams(
            dimension_semantics=("parallel",)),
    )(ids, w_slab, b_slab)

    return jnp.sum(loss_parts[:, 0, 0]) / (B * Sd)


# ----------------------------- parameter init / packing ----------------------
def init_params(key):
    keys = iter(jax.random.split(key, 64))

    def nrm(shape, scale=0.02):
        return (scale * jax.random.normal(next(keys), shape)).astype(jnp.float32)

    p = {}
    # embeddings
    p["enc_tok_emb"] = nrm((VOCAB, D))
    p["enc_pos_emb"] = nrm((MAX_POS, D))
    p["dec_tok_emb"] = nrm((VOCAB, D))
    p["dec_pos_emb"] = nrm((MAX_POS, D))
    # 7 LayerNorms packed into (8, D) gamma/beta tables (row 7 = padding)
    p["ln_g"] = jnp.ones((8, D), jnp.float32)
    p["ln_b"] = jnp.zeros((8, D), jnp.float32)
    # encoder self-attention (fused QKV) + FFN
    p["e_wqkv"] = nrm((D, 3 * D)); p["e_bqkv"] = jnp.zeros((1, 3 * D), jnp.float32)
    p["e_wo"] = nrm((D, D));       p["e_bo"] = jnp.zeros((1, D), jnp.float32)
    p["e_w1"] = nrm((D, FFN));     p["e_b1"] = jnp.zeros((1, FFN), jnp.float32)
    p["e_w2"] = nrm((FFN, D));     p["e_b2"] = jnp.zeros((1, D), jnp.float32)
    # decoder self-attention (fused QKV)
    p["d_wqkv"] = nrm((D, 3 * D)); p["d_bqkv"] = jnp.zeros((1, 3 * D), jnp.float32)
    p["d_wo"] = nrm((D, D));       p["d_bo"] = jnp.zeros((1, D), jnp.float32)
    # cross-attention (fused KV)
    p["c_wq"] = nrm((D, D));       p["c_bq"] = jnp.zeros((1, D), jnp.float32)
    p["c_wkv"] = nrm((D, 2 * D));  p["c_bkv"] = jnp.zeros((1, 2 * D), jnp.float32)
    p["c_wo"] = nrm((D, D));       p["c_bo"] = jnp.zeros((1, D), jnp.float32)
    # decoder FFN
    p["d_w1"] = nrm((D, FFN));     p["d_b1"] = jnp.zeros((1, FFN), jnp.float32)
    p["d_w2"] = nrm((FFN, D));     p["d_b2"] = jnp.zeros((1, D), jnp.float32)
    # LM head (V = 128, already lane-dense)
    p["lm_w"] = nrm((D, VOCAB))
    return p


def pack_params(params):
    """Pack all parameters into two lane-dense (rows, 128) slabs (bf16 + f32)."""
    def pack(specs, layout, total, dtype):
        slab = jnp.zeros((total, 128), dtype)
        for name, (r, c) in specs:
            off = layout[name][0]
            slab = slab.at[off:off + r, :c].set(params[name].astype(dtype))
        return slab

    w_slab = pack(_W_SPECS, _W_LAYOUT, _W_ROWS, jnp.bfloat16)
    b_slab = pack(_B_SPECS, _B_LAYOUT, _B_ROWS, jnp.float32)
    return w_slab, b_slab


# ----------------------------- main ------------------------------------------
if __name__ == "__main__":
    key = jax.random.PRNGKey(0)
    pkey, ekey, dkey = jax.random.split(key, 3)

    params = init_params(pkey)
    w_slab, b_slab = pack_params(params)

    B, S_ENC, S_DEC = 2, 8, 9  # decoder is shifted to length 8 inside forward
    # synthetic "tokenized" ids standing in for BertTokenizer output
    # (ids kept in [3, VOCAB) so the `== 2` shift in forward stays in range)
    enc_ids = jax.random.randint(ekey, (B, S_ENC), 3, VOCAB, dtype=jnp.int32)
    dec_ids = jax.random.randint(dkey, (B, S_DEC), 3, VOCAB, dtype=jnp.int32)

    loss = bert_encdec_loss(w_slab, b_slab, enc_ids, dec_ids)
    jax.block_until_ready(loss)
    assert loss.shape == () and jnp.isfinite(loss)
    print("KERNEL_OK")
</pallas_src>

<mosaic_0001>
module attributes {stable_mosaic.version = 11 : i64} {
  func.func @_forward_kernel(%arg0: i32, %arg1: memref<1x8x3xi32, #tpu.memory_space<vmem>>, %arg2: memref<768x128xbf16, #tpu.memory_space<vmem>>, %arg3: memref<104x128xf32, #tpu.memory_space<vmem>>, %arg4: memref<1x1x128xf32, #tpu.memory_space<vmem>>) attributes {dimension_semantics = [#tpu.dimension_semantics<parallel>], iteration_bounds = array<i64: 2>, scalar_prefetch = 0 : i64, scratch_operands = 0 : i64, tpu.core_type = #tpu.core_type<tc>, window_params = [{transform_indices = @transform_0, window_bounds = array<i64: 1, 8, 3>}, {pipeline_mode = #tpu.pipeline_mode<synchronous>, transform_indices = @transform_1, window_bounds = array<i64: 768, 128>}, {pipeline_mode = #tpu.pipeline_mode<synchronous>, transform_indices = @transform_2, window_bounds = array<i64: 104, 128>}, {transform_indices = @transform_3, window_bounds = array<i64: 1, 1, 128>}]} {
    %c0 = arith.constant 0 : index
    %c0_0 = arith.constant 0 : index
    %c0_1 = arith.constant 0 : index
    %0 = vector.load %arg1[%c0, %c0_0, %c0_1] : memref<1x8x3xi32, #tpu.memory_space<vmem>>, vector<1x8x3xi32>
    %1 = vector.shape_cast %0 : vector<1x8x3xi32> to vector<8x3xi32>
    %2 = vector.extract_strided_slice %1 {offsets = [0, 0], sizes = [8, 1], strides = [1, 1]} : vector<8x3xi32> to vector<8x1xi32>
    %3 = vector.extract_strided_slice %1 {offsets = [0, 1], sizes = [8, 1], strides = [1, 1]} : vector<8x3xi32> to vector<8x1xi32>
    %4 = vector.extract_strided_slice %1 {offsets = [0, 2], sizes = [8, 1], strides = [1, 1]} : vector<8x3xi32> to vector<8x1xi32>
    %c0_2 = arith.constant 0 : index
    %c0_3 = arith.constant 0 : index
    %5 = vector.load %arg3[%c0_2, %c0_3] : memref<104x128xf32, #tpu.memory_space<vmem>>, vector<8x32xf32>
    %c8 = arith.constant 8 : index
    %c0_4 = arith.constant 0 : index
    %6 = vector.load %arg3[%c8, %c0_4] : memref<104x128xf32, #tpu.memory_space<vmem>>, vector<8x32xf32>
    %7 = tpu.iota {dimensions = array<i32: 1>} : vector<8x128xi32>
    %8 = vector.broadcast %2 : vector<8x1xi32> to vector<8x128xi32>
    %9 = arith.cmpi eq, %7, %8 : vector<8x128xi32>
    %10 = arith.extui %9 : vector<8x128xi1> to vector<8x128xi32>
    %11 = arith.sitofp %10 : vector<8x128xi32> to vector<8x128xf32>
    %12 = arith.truncf %11 : vector<8x128xf32> to vector<8x128xbf16>
    %c0_5 = arith.constant 0 : index
    %c0_6 = arith.constant 0 : index
    %13 = vector.load %arg2[%c0_5, %c0_6] : memref<768x128xbf16, #tpu.memory_space<vmem>>, vector<128x32xbf16>
    %cst = arith.constant dense<0.000000e+00> : vector<8x32xf32>
    %14 = tpu.matmul %12, %13, %cst {dimension_numbers = #tpu.dot_dimension_numbers<[1], [0], [0], [1], [0, 0, 1, 1], [], []>} : vector<8x128xbf16>, vector<128x32xbf16>, vector<8x32xf32> -> vector<8x32xf32>
    %c128 = arith.constant 128 : index
    %c0_7 = arith.constant 0 : index
    %15 = vector.load %arg2[%c128, %c0_7] : memref<768x128xbf16, #tpu.memory_space<vmem>>, vector<8x32xbf16>
    %16 = arith.extf %15 : vector<8x32xbf16> to vector<8x32xf32>
    %17 = arith.addf %14, %16 : vector<8x32xf32>
    %cst_8 = arith.constant dense<0.000000e+00> : vector<8xf32>
    %18 = vector.multi_reduction <add>, %17, %cst_8 [1] : vector<8x32xf32> to vector<8xf32>
    %19 = vector.shape_cast %18 : vector<8xf32> to vector<8x1xf32>
    %cst_9 = arith.constant 3.200000e+01 : f32
    %20 = vector.broadcast %cst_9 : f32 to vector<8x1xf32>
    %21 = arith.divf %19, %20 : vector<8x1xf32>
    %22 = vector.broadcast %21 : vector<8x1xf32> to vector<8x32xf32>
    %23 = arith.subf %17, %22 : vector<8x32xf32>
    %24 = arith.mulf %23, %23 : vector<8x32xf32>
    %cst_10 = arith.constant dense<0.000000e+00> : vector<8xf32>
    %25 = vector.multi_reduction <add>, %24, %cst_10 [1] : vector<8x32xf32> to vector<8xf32>
    %26 = vector.shape_cast %25 : vector<8xf32> to vector<8x1xf32>
    %cst_11 = arith.constant 3.200000e+01 : f32
    %27 = vector.broadcast %cst_11 : f32 to vector<8x1xf32>
    %28 = arith.divf %26, %27 : vector<8x1xf32>
    %29 = vector.broadcast %21 : vector<8x1xf32> to vector<8x32xf32>
    %30 = arith.subf %17, %29 : vector<8x32xf32>
    %cst_12 = arith.constant 9.99999996E-13 : f32
    %31 = vector.broadcast %cst_12 : f32 to vector<8x1xf32>
    %32 = arith.addf %28, %31 : vector<8x1xf32>
    %33 = math.rsqrt %32 : vector<8x1xf32>
    %34 = vector.broadcast %33 : vector<8x1xf32> to vector<8x32xf32>
    %35 = arith.mulf %30, %34 : vector<8x32xf32>
    %36 = vector.extract_strided_slice %5 {offsets = [0, 0], sizes = [1, 32], strides = [1, 1]} : vector<8x32xf32> to vector<1x32xf32>
    %37 = vector.broadcast %36 : vector<1x32xf32> to vector<8x32xf32>
    %38 = arith.mulf %35, %37 : vector<8x32xf32>
    %39 = vector.extract_strided_slice %6 {offsets = [0, 0], sizes = [1, 32], strides = [1, 1]} : vector<8x32xf32> to vector<1x32xf32>
    %40 = vector.broadcast %39 : vector<1x32xf32> to vector<8x32xf32>
    %41 = arith.addf %38, %40 : vector<8x32xf32>
    %42 = arith.truncf %41 : vector<8x32xf32> to vector<8x32xbf16>
    %c320 = arith.constant 320 : index
    %c0_13 = arith.constant 0 : index
    %43 = vector.load %arg2[%c320, %c0_13] : memref<768x128xbf16, #tpu.memory_space<vmem>>, vector<32x96xbf16>
    %cst_14 = arith.constant dense<0.000000e+00> : vector<8x96xf32>
    %44 = tpu.matmul %42, %43, %cst_14 {dimension_numbers = #tpu.dot_dimension_numbers<[1], [0], [0], [1], [0, 0, 1, 1], [], []>} : vector<8x32xbf16>, vector<32x96xbf16>, vector<8x96xf32> -> vector<8x96xf32>
    %c16 = arith.constant 16 : index
    %c0_15 = arith.constant 0 : index
    %45 = vector.load %arg3[%c16, %c0_15] : memref<104x128xf32, #tpu.memory_space<vmem>>, vector<1x96xf32>
    %46 = vector.broadcast %45 : vector<1x96xf32> to vector<8x96xf32>
    %47 = arith.addf %44, %46 : vector<8x96xf32>
    %48 = vector.extract_strided_slice %47 {offsets = [0, 0], sizes = [8, 32], strides = [1, 1]} : vector<8x96xf32> to vector<8x32xf32>
    %49 = vector.extract_strided_slice %47 {offsets = [0, 32], sizes = [8, 32], strides = [1, 1]} : vector<8x96xf32> to vector<8x32xf32>
    %50 = vector.extract_strided_slice %47 {offsets = [0, 64], sizes = [8, 32], strides = [1, 1]} : vector<8x96xf32> to vector<8x32xf32>
    %51 = vector.extract_strided_slice %48 {offsets = [0, 0], sizes = [8, 16], strides = [1, 1]} : vector<8x32xf32> to vector<8x16xf32>
    %52 = vector.extract_strided_slice %49 {offsets = [0, 0], sizes = [8, 16], strides = [1, 1]} : vector<8x32xf32> to vector<8x16xf32>
    %53 = tpu.transpose %52, [1, 0] : vector<8x16xf32> -> vector<16x8xf32>
    %cst_16 = arith.constant dense<0.000000e+00> : vector<8x8xf32>
    %54 = tpu.matmul %51, %53, %cst_16 {dimension_numbers = #tpu.dot_dimension_numbers<[1], [0], [0], [1], [0, 0, 1, 1], [], []>} : vector<8x16xf32>, vector<16x8xf32>, vector<8x8xf32> -> vector<8x8xf32>
    %cst_17 = arith.constant 2.500000e-01 : f32
    %55 = vector.broadcast %cst_17 : f32 to vector<8x8xf32>
    %56 = arith.mulf %54, %55 : vector<8x8xf32>
    %cst_18 = arith.constant dense<0xFF800000> : vector<8xf32>
    %57 = vector.multi_reduction <maximumf>, %56, %cst_18 [1] : vector<8x8xf32> to vector<8xf32>
    %58 = vector.shape_cast %57 : vector<8xf32> to vector<8x1xf32>
    %59 = vector.broadcast %58 : vector<8x1xf32> to vector<8x8xf32>
    %60 = arith.subf %56, %59 : vector<8x8xf32>
    %61 = math.exp %60 : vector<8x8xf32>
    %cst_19 = arith.constant dense<0.000000e+00> : vector<8xf32>
    %62 = vector.multi_reduction <add>, %61, %cst_19 [1] : vector<8x8xf32> to vector<8xf32>
    %63 = vector.shape_cast %62 : vector<8xf32> to vector<8x1xf32>
    %64 = tpu.reciprocal %63 {approx = true} : vector<8x1xf32> -> vector<8x1xf32>
    %65 = vector.broadcast %64 : vector<8x1xf32> to vector<8x8xf32>
    %66 = arith.mulf %61, %65 : vector<8x8xf32>
    %67 = vector.extract_strided_slice %50 {offsets = [0, 0], sizes = [8, 16], strides = [1, 1]} : vector<8x32xf32> to vector<8x16xf32>
    %cst_20 = arith.constant dense<0.000000e+00> : vector<8x16xf32>
    %68 = tpu.matmul %66, %67, %cst_20 {dimension_numbers = #tpu.dot_dimension_numbers<[1], [0], [0], [1], [0, 0, 1, 1], [], []>} : vector<8x8xf32>, vector<8x16xf32>, vector<8x16xf32> -> vector<8x16xf32>
    %69 = vector.extract_strided_slice %48 {offsets = [0, 16], sizes = [8, 16], strides = [1, 1]} : vector<8x32xf32> to vector<8x16xf32>
    %70 = vector.extract_strided_slice %49 {offsets = [0, 16], sizes = [8, 16], strides = [1, 1]} : vector<8x32xf32> to vector<8x16xf32>
    %71 = tpu.transpose %70, [1, 0] : vector<8x16xf32> -> vector<16x8xf32>
    %cst_21 = arith.constant dense<0.000000e+00> : vector<8x8xf32>
    %72 = tpu.matmul %69, %71, %cst_21 {dimension_numbers = #tpu.dot_dimension_numbers<[1], [0], [0], [1], [0, 0, 1, 1], [], []>} : vector<8x16xf32>, vector<16x8xf32>, vector<8x8xf32> -> vector<8x8xf32>
    %cst_22 = arith.constant 2.500000e-01 : f32
    %73 = vector.broadcast %cst_22 : f32 to vector<8x8xf32>
    %74 = arith.mulf %72, %73 : vector<8x8xf32>
    %cst_23 = arith.constant dense<0xFF800000> : vector<8xf32>
    %75 = vector.multi_reduction <maximumf>, %74, %cst_23 [1] : vector<8x8xf32> to vector<8xf32>
    %76 = vector.shape_cast %75 : vector<8xf32> to vector<8x1xf32>
    %77 = vector.broadcast %76 : vector<8x1xf32> to vector<8x8xf32>
    %78 = arith.subf %74, %77 : vector<8x8xf32>
    %79 = math.exp %78 : vector<8x8xf32>
    %cst_24 = arith.constant dense<0.000000e+00> : vector<8xf32>
    %80 = vector.multi_reduction <add>, %79, %cst_24 [1] : vector<8x8xf32> to vector<8xf32>
    %81 = vector.shape_cast %80 : vector<8xf32> to vector<8x1xf32>
    %82 = tpu.reciprocal %81 {approx = true} : vector<8x1xf32> -> vector<8x1xf32>
    %83 = vector.broadcast %82 : vector<8x1xf32> to vector<8x8xf32>
    %84 = arith.mulf %79, %83 : vector<8x8xf32>
    %85 = vector.extract_strided_slice %50 {offsets = [0, 16], sizes = [8, 16], strides = [1, 1]} : vector<8x32xf32> to vector<8x16xf32>
    %cst_25 = arith.constant dense<0.000000e+00> : vector<8x16xf32>
    %86 = tpu.matmul %84, %85, %cst_25 {dimension_numbers = #tpu.dot_dimension_numbers<[1], [0], [0], [1], [0, 0, 1, 1], [], []>} : vector<8x8xf32>, vector<8x16xf32>, vector<8x16xf32> -> vector<8x16xf32>
    %87 = tpu.concatenate %68, %86 in 1 : vector<8x16xf32>, vector<8x16xf32> -> vector<8x32xf32>
    %88 = arith.truncf %87 : vector<8x32xf32> to vector<8x32xbf16>
    %c352 = arith.constant 352 : index
    %c0_26 = arith.constant 0 : index
    %89 = vector.load %arg2[%c352, %c0_26] : memref<768x128xbf16, #tpu.memory_space<vmem>>, vector<32x32xbf16>
    %cst_27 = arith.constant dense<0.000000e+00> : vector<8x32xf32>
    %90 = tpu.matmul %88, %89, %cst_27 {dimension_numbers = #tpu.dot_dimension_numbers<[1], [0], [0], [1], [0, 0, 1, 1], [], []>} : vector<8x32xbf16>, vector<32x32xbf16>, vector<8x32xf32> -> vector<8x32xf32>
    %c24 = arith.constant 24 : index
    %c0_28 = arith.constant 0 : index
    %91 = vector.load %arg3[%c24, %c0_28] : memref<104x128xf32, #tpu.memory_space<vmem>>, vector<1x32xf32>
    %92 = vector.broadcast %91 : vector<1x32xf32> to vector<8x32xf32>
    %93 = arith.addf %90, %92 : vector<8x32xf32>
    %94 = arith.addf %41, %93 : vector<8x32xf32>
    %cst_29 = arith.constant dense<0.000000e+00> : vector<8xf32>
    %95 = vector.multi_reduction <add>, %94, %cst_29 [1] : vector<8x32xf32> to vector<8xf32>
    %96 = vector.shape_cast %95 : vector<8xf32> to vector<8x1xf32>
    %cst_30 = arith.constant 3.200000e+01 : f32
    %97 = vector.broadcast %cst_30 : f32 to vector<8x1xf32>
    %98 = arith.divf %96, %97 : vector<8x1xf32>
    %99 = vector.broadcast %98 : vector<8x1xf32> to vector<8x32xf32>
    %100 = arith.subf %94, %99 : vector<8x32xf32>
    %101 = arith.mulf %100, %100 : vector<8x32xf32>
    %cst_31 = arith.constant dense<0.000000e+00> : vector<8xf32>
    %102 = vector.multi_reduction <add>, %101, %cst_31 [1] : vector<8x32xf32> to vector<8xf32>
    %103 = vector.shape_cast %102 : vector<8xf32> to vector<8x1xf32>
    %cst_32 = arith.constant 3.200000e+01 : f32
    %104 = vector.broadcast %cst_32 : f32 to vector<8x1xf32>
    %105 = arith.divf %103, %104 : vector<8x1xf32>
    %106 = vector.broadcast %98 : vector<8x1xf32> to vector<8x32xf32>
    %107 = arith.subf %94, %106 : vector<8x32xf32>
    %cst_33 = arith.constant 9.99999996E-13 : f32
    %108 = vector.broadcast %cst_33 : f32 to vector<8x1xf32>
    %109 = arith.addf %105, %108 : vector<8x1xf32>
    %110 = math.rsqrt %109 : vector<8x1xf32>
    %111 = vector.broadcast %110 : vector<8x1xf32> to vector<8x32xf32>
    %112 = arith.mulf %107, %111 : vector<8x32xf32>
    %113 = vector.extract_strided_slice %5 {offsets = [1, 0], sizes = [1, 32], strides = [1, 1]} : vector<8x32xf32> to vector<1x32xf32>
    %114 = vector.broadcast %113 : vector<1x32xf32> to vector<8x32xf32>
    %115 = arith.mulf %112, %114 : vector<8x32xf32>
    %116 = vector.extract_strided_slice %6 {offsets = [1, 0], sizes = [1, 32], strides = [1, 1]} : vector<8x32xf32> to vector<1x32xf32>
    %117 = vector.broadcast %116 : vector<1x32xf32> to vector<8x32xf32>
    %118 = arith.addf %115, %117 : vector<8x32xf32>
    %119 = arith.truncf %118 : vector<8x32xf32> to vector<8x32xbf16>
    %c384 = arith.constant 384 : index
    %c0_34 = arith.constant 0 : index
    %120 = vector.load %arg2[%c384, %c0_34] : memref<768x128xbf16, #tpu.memory_space<vmem>>, vector<32x64xbf16>
    %cst_35 = arith.constant dense<0.000000e+00> : vector<8x64xf32>
    %121 = tpu.matmul %119, %120, %cst_35 {dimension_numbers = #tpu.dot_dimension_numbers<[1], [0], [0], [1], [0, 0, 1, 1], [], []>} : vector<8x32xbf16>, vector<32x64xbf16>, vector<8x64xf32> -> vector<8x64xf32>
    %c32 = arith.constant 32 : index
    %c0_36 = arith.constant 0 : index
    %122 = vector.load %arg3[%c32, %c0_36] : memref<104x128xf32, #tpu.memory_space<vmem>>, vector<1x64xf32>
    %123 = vector.broadcast %122 : vector<1x64xf32> to vector<8x64xf32>
    %124 = arith.addf %121, %123 : vector<8x64xf32>
    %125 = arith.mulf %124, %124 : vector<8x64xf32>
    %126 = arith.mulf %124, %125 : vector<8x64xf32>
    %cst_37 = arith.constant 4.471500e-02 : f32
    %127 = vector.broadcast %cst_37 : f32 to vector<8x64xf32>
    %128 = arith.mulf %127, %126 : vector<8x64xf32>
    %129 = arith.addf %124, %128 : vector<8x64xf32>
    %cst_38 = arith.constant 0.797884583 : f32
    %130 = vector.broadcast %cst_38 : f32 to vector<8x64xf32>
    %131 = arith.mulf %130, %129 : vector<8x64xf32>
    %132 = math.tanh %131 : vector<8x64xf32>
    %cst_39 = arith.constant 1.000000e+00 : f32
    %133 = vector.broadcast %cst_39 : f32 to vector<8x64xf32>
    %134 = arith.addf %133, %132 : vector<8x64xf32>
    %cst_40 = arith.constant 5.000000e-01 : f32
    %135 = vector.broadcast %cst_40 : f32 to vector<8x64xf32>
    %136 = arith.mulf %135, %134 : vector<8x64xf32>
    %137 = arith.mulf %124, %136 : vector<8x64xf32>
    %138 = arith.truncf %137 : vector<8x64xf32> to vector<8x64xbf16>
    %c416 = arith.constant 416 : index
    %c0_41 = arith.constant 0 : index
    %139 = vector.load %arg2[%c416, %c0_41] : memref<768x128xbf16, #tpu.memory_space<vmem>>, vector<64x32xbf16>
    %cst_42 = arith.constant dense<0.000000e+00> : vector<8x32xf32>
    %140 = tpu.matmul %138, %139, %cst_42 {dimension_numbers = #tpu.dot_dimension_numbers<[1], [0], [0], [1], [0, 0, 1, 1], [], []>} : vector<8x64xbf16>, vector<64x32xbf16>, vector<8x32xf32> -> vector<8x32xf32>
    %c40 = arith.constant 40 : index
    %c0_43 = arith.constant 0 : index
    %141 = vector.load %arg3[%c40, %c0_43] : memref<104x128xf32, #tpu.memory_space<vmem>>, vector<1x32xf32>
    %142 = vector.broadcast %141 : vector<1x32xf32> to vector<8x32xf32>
    %143 = arith.addf %140, %142 : vector<8x32xf32>
    %144 = arith.addf %118, %143 : vector<8x32xf32>
    %cst_44 = arith.constant dense<0.000000e+00> : vector<8xf32>
    %145 = vector.multi_reduction <add>, %144, %cst_44 [1] : vector<8x32xf32> to vector<8xf32>
    %146 = vector.shape_cast %145 : vector<8xf32> to vector<8x1xf32>
    %cst_45 = arith.constant 3.200000e+01 : f32
    %147 = vector.broadcast %cst_45 : f32 to vector<8x1xf32>
    %148 = arith.divf %146, %147 : vector<8x1xf32>
    %149 = vector.broadcast %148 : vector<8x1xf32> to vector<8x32xf32>
    %150 = arith.subf %144, %149 : vector<8x32xf32>
    %151 = arith.mulf %150, %150 : vector<8x32xf32>
    %cst_46 = arith.constant dense<0.000000e+00> : vector<8xf32>
    %152 = vector.multi_reduction <add>, %151, %cst_46 [1] : vector<8x32xf32> to vector<8xf32>
    %153 = vector.shape_cast %152 : vector<8xf32> to vector<8x1xf32>
    %cst_47 = arith.constant 3.200000e+01 : f32
    %154 = vector.broadcast %cst_47 : f32 to vector<8x1xf32>
    %155 = arith.divf %153, %154 : vector<8x1xf32>
    %156 = vector.broadcast %148 : vector<8x1xf32> to vector<8x32xf32>
    %157 = arith.subf %144, %156 : vector<8x32xf32>
    %cst_48 = arith.constant 9.99999996E-13 : f32
    %158 = vector.broadcast %cst_48 : f32 to vector<8x1xf32>
    %159 = arith.addf %155, %158 : vector<8x1xf32>
    %160 = math.rsqrt %159 : vector<8x1xf32>
    %161 = vector.broadcast %160 : vector<8x1xf32> to vector<8x32xf32>
    %162 = arith.mulf %157, %161 : vector<8x32xf32>
    %163 = vector.extract_strided_slice %5 {offsets = [2, 0], sizes = [1, 32], strides = [1, 1]} : vector<8x32xf32> to vector<1x32xf32>
    %164 = vector.broadcast %163 : vector<1x32xf32> to vector<8x32xf32>
    %165 = arith.mulf %162, %164 : vector<8x32xf32>
    %166 = vector.extract_strided_slice %6 {offsets = [2, 0], sizes = [1, 32], strides = [1, 1]} : vector<8x32xf32> to vector<1x32xf32>
    %167 = vector.broadcast %166 : vector<1x32xf32> to vector<8x32xf32>
    %168 = arith.addf %165, %167 : vector<8x32xf32>
    %169 = tpu.iota {dimensions = array<i32: 1>} : vector<8x128xi32>
    %170 = vector.broadcast %3 : vector<8x1xi32> to vector<8x128xi32>
    %171 = arith.cmpi eq, %169, %170 : vector<8x128xi32>
    %172 = arith.extui %171 : vector<8x128xi1> to vector<8x128xi32>
    %173 = arith.sitofp %172 : vector<8x128xi32> to vector<8x128xf32>
    %174 = arith.truncf %173 : vector<8x128xf32> to vector<8x128xbf16>
    %c160 = arith.constant 160 : index
    %c0_49 = arith.constant 0 : index
    %175 = vector.load %arg2[%c160, %c0_49] : memref<768x128xbf16, #tpu.memory_space<vmem>>, vector<128x32xbf16>
    %cst_50 = arith.constant dense<0.000000e+00> : vector<8x32xf32>
    %176 = tpu.matmul %174, %175, %cst_50 {dimension_numbers = #tpu.dot_dimension_numbers<[1], [0], [0], [1], [0, 0, 1, 1], [], []>} : vector<8x128xbf16>, vector<128x32xbf16>, vector<8x32xf32> -> vector<8x32xf32>
    %c288 = arith.constant 288 : index
    %c0_51 = arith.constant 0 : index
    %177 = vector.load %arg2[%c288, %c0_51] : memref<768x128xbf16, #tpu.memory_space<vmem>>, vector<8x32xbf16>
    %178 = arith.extf %177 : vector<8x32xbf16> to vector<8x32xf32>
    %179 = arith.addf %176, %178 : vector<8x32xf32>
    %cst_52 = arith.constant dense<0.000000e+00> : vector<8xf32>
    %180 = vector.multi_reduction <add>, %179, %cst_52 [1] : vector<8x32xf32> to vector<8xf32>
    %181 = vector.shape_cast %180 : vector<8xf32> to vector<8x1xf32>
    %cst_53 = arith.constant 3.200000e+01 : f32
    %182 = vector.broadcast %cst_53 : f32 to vector<8x1xf32>
    %183 = arith.divf %181, %182 : vector<8x1xf32>
    %184 = vector.broadcast %183 : vector<8x1xf32> to vector<8x32xf32>
    %185 = arith.subf %179, %184 : vector<8x32xf32>
    %186 = arith.mulf %185, %185 : vector<8x32xf32>
    %cst_54 = arith.constant dense<0.000000e+00> : vector<8xf32>
    %187 = vector.multi_reduction <add>, %186, %cst_54 [1] : vector<8x32xf32> to vector<8xf32>
    %188 = vector.shape_cast %187 : vector<8xf32> to vector<8x1xf32>
    %cst_55 = arith.constant 3.200000e+01 : f32
    %189 = vector.broadcast %cst_55 : f32 to vector<8x1xf32>
    %190 = arith.divf %188, %189 : vector<8x1xf32>
    %191 = vector.broadcast %183 : vector<8x1xf32> to vector<8x32xf32>
    %192 = arith.subf %179, %191 : vector<8x32xf32>
    %cst_56 = arith.constant 9.99999996E-13 : f32
    %193 = vector.broadcast %cst_56 : f32 to vector<8x1xf32>
    %194 = arith.addf %190, %193 : vector<8x1xf32>
    %195 = math.rsqrt %194 : vector<8x1xf32>
    %196 = vector.broadcast %195 : vector<8x1xf32> to vector<8x32xf32>
    %197 = arith.mulf %192, %196 : vector<8x32xf32>
    %198 = vector.extract_strided_slice %5 {offsets = [3, 0], sizes = [1, 32], strides = [1, 1]} : vector<8x32xf32> to vector<1x32xf32>
    %199 = vector.broadcast %198 : vector<1x32xf32> to vector<8x32xf32>
    %200 = arith.mulf %197, %199 : vector<8x32xf32>
    %201 = vector.extract_strided_slice %6 {offsets = [3, 0], sizes = [1, 32], strides = [1, 1]} : vector<8x32xf32> to vector<1x32xf32>
    %202 = vector.broadcast %201 : vector<1x32xf32> to vector<8x32xf32>
    %203 = arith.addf %200, %202 : vector<8x32xf32>
    %204 = arith.truncf %203 : vector<8x32xf32> to vector<8x32xbf16>
    %c480 = arith.constant 480 : index
    %c0_57 = arith.constant 0 : index
    %205 = vector.load %arg2[%c480, %c0_57] : memref<768x128xbf16, #tpu.memory_space<vmem>>, vector<32x96xbf16>
    %cst_58 = arith.constant dense<0.000000e+00> : vector<8x96xf32>
    %206 = tpu.matmul %204, %205, %cst_58 {dimension_numbers = #tpu.dot_dimension_numbers<[1], [0], [0], [1], [0, 0, 1, 1], [], []>} : vector<8x32xbf16>, vector<32x96xbf16>, vector<8x96xf32> -> vector<8x96xf32>
    %c48 = arith.constant 48 : index
    %c0_59 = arith.constant 0 : index
    %207 = vector.load %arg3[%c48, %c0_59] : memref<104x128xf32, #tpu.memory_space<vmem>>, vector<1x96xf32>
    %208 = vector.broadcast %207 : vector<1x96xf32> to vector<8x96xf32>
    %209 = arith.addf %206, %208 : vector<8x96xf32>
    %210 = vector.extract_strided_slice %209 {offsets = [0, 0], sizes = [8, 32], strides = [1, 1]} : vector<8x96xf32> to vector<8x32xf32>
    %211 = vector.extract_strided_slice %209 {offsets = [0, 32], sizes = [8, 32], strides = [1, 1]} : vector<8x96xf32> to vector<8x32xf32>
    %212 = vector.extract_strided_slice %209 {offsets = [0, 64], sizes = [8, 32], strides = [1, 1]} : vector<8x96xf32> to vector<8x32xf32>
    %213 = tpu.iota {dimensions = array<i32: 0>} : vector<8x8xi32>
    %214 = tpu.iota {dimensions = array<i32: 1>} : vector<8x8xi32>
    %215 = arith.cmpi sge, %213, %214 : vector<8x8xi32>
    %216 = vector.extract_strided_slice %210 {offsets = [0, 0], sizes = [8, 16], strides = [1, 1]} : vector<8x32xf32> to vector<8x16xf32>
    %217 = vector.extract_strided_slice %211 {offsets = [0, 0], sizes = [8, 16], strides = [1, 1]} : vector<8x32xf32> to vector<8x16xf32>
    %218 = tpu.transpose %217, [1, 0] : vector<8x16xf32> -> vector<16x8xf32>
    %cst_60 = arith.constant dense<0.000000e+00> : vector<8x8xf32>
    %219 = tpu.matmul %216, %218, %cst_60 {dimension_numbers = #tpu.dot_dimension_numbers<[1], [0], [0], [1], [0, 0, 1, 1], [], []>} : vector<8x16xf32>, vector<16x8xf32>, vector<8x8xf32> -> vector<8x8xf32>
    %cst_61 = arith.constant 2.500000e-01 : f32
    %220 = vector.broadcast %cst_61 : f32 to vector<8x8xf32>
    %221 = arith.mulf %219, %220 : vector<8x8xf32>
    %cst_62 = arith.constant -1.000000e+09 : f32
    %222 = vector.broadcast %cst_62 : f32 to vector<8x8xf32>
    %223 = arith.select %215, %221, %222 : vector<8x8xi1>, vector<8x8xf32>
    %cst_63 = arith.constant dense<0xFF800000> : vector<8xf32>
    %224 = vector.multi_reduction <maximumf>, %223, %cst_63 [1] : vector<8x8xf32> to vector<8xf32>
    %225 = vector.shape_cast %224 : vector<8xf32> to vector<8x1xf32>
    %226 = vector.broadcast %225 : vector<8x1xf32> to vector<8x8xf32>
    %227 = arith.subf %223, %226 : vector<8x8xf32>
    %228 = math.exp %227 : vector<8x8xf32>
    %cst_64 = arith.constant dense<0.000000e+00> : vector<8xf32>
    %229 = vector.multi_reduction <add>, %228, %cst_64 [1] : vector<8x8xf32> to vector<8xf32>
    %230 = vector.shape_cast %229 : vector<8xf32> to vector<8x1xf32>
    %231 = tpu.reciprocal %230 {approx = true} : vector<8x1xf32> -> vector<8x1xf32>
    %232 = vector.broadcast %231 : vector<8x1xf32> to vector<8x8xf32>
    %233 = arith.mulf %228, %232 : vector<8x8xf32>
    %234 = vector.extract_strided_slice %212 {offsets = [0, 0], sizes = [8, 16], strides = [1, 1]} : vector<8x32xf32> to vector<8x16xf32>
    %cst_65 = arith.constant dense<0.000000e+00> : vector<8x16xf32>
    %235 = tpu.matmul %233, %234, %cst_65 {dimension_numbers = #tpu.dot_dimension_numbers<[1], [0], [0], [1], [0, 0, 1, 1], [], []>} : vector<8x8xf32>, vector<8x16xf32>, vector<8x16xf32> -> vector<8x16xf32>
    %236 = vector.extract_strided_slice %210 {offsets = [0, 16], sizes = [8, 16], strides = [1, 1]} : vector<8x32xf32> to vector<8x16xf32>
    %237 = vector.extract_strided_slice %211 {offsets = [0, 16], sizes = [8, 16], strides = [1, 1]} : vector<8x32xf32> to vector<8x16xf32>
    %238 = tpu.transpose %237, [1, 0] : vector<8x16xf32> -> vector<16x8xf32>
    %cst_66 = arith.constant dense<0.000000e+00> : vector<8x8xf32>
    %239 = tpu.matmul %236, %238, %cst_66 {dimension_numbers = #tpu.dot_dimension_numbers<[1], [0], [0], [1], [0, 0, 1, 1], [], []>} : vector<8x16xf32>, vector<16x8xf32>, vector<8x8xf32> -> vector<8x8xf32>
    %cst_67 = arith.constant 2.500000e-01 : f32
    %240 = vector.broadcast %cst_67 : f32 to vector<8x8xf32>
    %241 = arith.mulf %239, %240 : vector<8x8xf32>
    %cst_68 = arith.constant -1.000000e+09 : f32
    %242 = vector.broadcast %cst_68 : f32 to vector<8x8xf32>
    %243 = arith.select %215, %241, %242 : vector<8x8xi1>, vector<8x8xf32>
    %cst_69 = arith.constant dense<0xFF800000> : vector<8xf32>
    %244 = vector.multi_reduction <maximumf>, %243, %cst_69 [1] : vector<8x8xf32> to vector<8xf32>
    %245 = vector.shape_cast %244 : vector<8xf32> to vector<8x1xf32>
    %246 = vector.broadcast %245 : vector<8x1xf32> to vector<8x8xf32>
    %247 = arith.subf %243, %246 : vector<8x8xf32>
    %248 = math.exp %247 : vector<8x8xf32>
    %cst_70 = arith.constant dense<0.000000e+00> : vector<8xf32>
    %249 = vector.multi_reduction <add>, %248, %cst_70 [1] : vector<8x8xf32> to vector<8xf32>
    %250 = vector.shape_cast %249 : vector<8xf32> to vector<8x1xf32>
    %251 = tpu.reciprocal %250 {approx = true} : vector<8x1xf32> -> vector<8x1xf32>
    %252 = vector.broadcast %251 : vector<8x1xf32> to vector<8x8xf32>
    %253 = arith.mulf %248, %252 : vector<8x8xf32>
    %254 = vector.extract_strided_slice %212 {offsets = [0, 16], sizes = [8, 16], strides = [1, 1]} : vector<8x32xf32> to vector<8x16xf32>
    %cst_71 = arith.constant dense<0.000000e+00> : vector<8x16xf32>
    %255 = tpu.matmul %253, %254, %cst_71 {dimension_numbers = #tpu.dot_dimension_numbers<[1], [0], [0], [1], [0, 0, 1, 1], [], []>} : vector<8x8xf32>, vector<8x16xf32>, vector<8x16xf32> -> vector<8x16xf32>
    %256 = tpu.concatenate %235, %255 in 1 : vector<8x16xf32>, vector<8x16xf32> -> vector<8x32xf32>
    %257 = arith.truncf %256 : vector<8x32xf32> to vector<8x32xbf16>
    %c512 = arith.constant 512 : index
    %c0_72 = arith.constant 0 : index
    %258 = vector.load %arg2[%c512, %c0_72] : memref<768x128xbf16, #tpu.memory_space<vmem>>, vector<32x32xbf16>
    %cst_73 = arith.constant dense<0.000000e+00> : vector<8x32xf32>
    %259 = tpu.matmul %257, %258, %cst_73 {dimension_numbers = #tpu.dot_dimension_numbers<[1], [0], [0], [1], [0, 0, 1, 1], [], []>} : vector<8x32xbf16>, vector<32x32xbf16>, vector<8x32xf32> -> vector<8x32xf32>
    %c56 = arith.constant 56 : index
    %c0_74 = arith.constant 0 : index
    %260 = vector.load %arg3[%c56, %c0_74] : memref<104x128xf32, #tpu.memory_space<vmem>>, vector<1x32xf32>
    %261 = vector.broadcast %260 : vector<1x32xf32> to vector<8x32xf32>
    %262 = arith.addf %259, %261 : vector<8x32xf32>
    %263 = arith.addf %203, %262 : vector<8x32xf32>
    %cst_75 = arith.constant dense<0.000000e+00> : vector<8xf32>
    %264 = vector.multi_reduction <add>, %263, %cst_75 [1] : vector<8x32xf32> to vector<8xf32>
    %265 = vector.shape_cast %264 : vector<8xf32> to vector<8x1xf32>
    %cst_76 = arith.constant 3.200000e+01 : f32
    %266 = vector.broadcast %cst_76 : f32 to vector<8x1xf32>
    %267 = arith.divf %265, %266 : vector<8x1xf32>
    %268 = vector.broadcast %267 : vector<8x1xf32> to vector<8x32xf32>
    %269 = arith.subf %263, %268 : vector<8x32xf32>
    %270 = arith.mulf %269, %269 : vector<8x32xf32>
    %cst_77 = arith.constant dense<0.000000e+00> : vector<8xf32>
    %271 = vector.multi_reduction <add>, %270, %cst_77 [1] : vector<8x32xf32> to vector<8xf32>
    %272 = vector.shape_cast %271 : vector<8xf32> to vector<8x1xf32>
    %cst_78 = arith.constant 3.200000e+01 : f32
    %273 = vector.broadcast %cst_78 : f32 to vector<8x1xf32>
    %274 = arith.divf %272, %273 : vector<8x1xf32>
    %275 = vector.broadcast %267 : vector<8x1xf32> to vector<8x32xf32>
    %276 = arith.subf %263, %275 : vector<8x32xf32>
    %cst_79 = arith.constant 9.99999996E-13 : f32
    %277 = vector.broadcast %cst_79 : f32 to vector<8x1xf32>
    %278 = arith.addf %274, %277 : vector<8x1xf32>
    %279 = math.rsqrt %278 : vector<8x1xf32>
    %280 = vector.broadcast %279 : vector<8x1xf32> to vector<8x32xf32>
    %281 = arith.mulf %276, %280 : vector<8x32xf32>
    %282 = vector.extract_strided_slice %5 {offsets = [4, 0], sizes = [1, 32], strides = [1, 1]} : vector<8x32xf32> to vector<1x32xf32>
    %283 = vector.broadcast %282 : vector<1x32xf32> to vector<8x32xf32>
    %284 = arith.mulf %281, %283 : vector<8x32xf32>
    %285 = vector.extract_strided_slice %6 {offsets = [4, 0], sizes = [1, 32], strides = [1, 1]} : vector<8x32xf32> to vector<1x32xf32>
    %286 = vector.broadcast %285 : vector<1x32xf32> to vector<8x32xf32>
    %287 = arith.addf %284, %286 : vector<8x32xf32>
    %288 = arith.truncf %287 : vector<8x32xf32> to vector<8x32xbf16>
    %c544 = arith.constant 544 : index
    %c0_80 = arith.constant 0 : index
    %289 = vector.load %arg2[%c544, %c0_80] : memref<768x128xbf16, #tpu.memory_space<vmem>>, vector<32x32xbf16>
    %cst_81 = arith.constant dense<0.000000e+00> : vector<8x32xf32>
    %290 = tpu.matmul %288, %289, %cst_81 {dimension_numbers = #tpu.dot_dimension_numbers<[1], [0], [0], [1], [0, 0, 1, 1], [], []>} : vector<8x32xbf16>, vector<32x32xbf16>, vector<8x32xf32> -> vector<8x32xf32>
    %c64 = arith.constant 64 : index
    %c0_82 = arith.constant 0 : index
    %291 = vector.load %arg3[%c64, %c0_82] : memref<104x128xf32, #tpu.memory_space<vmem>>, vector<1x32xf32>
    %292 = vector.broadcast %291 : vector<1x32xf32> to vector<8x32xf32>
    %293 = arith.addf %290, %292 : vector<8x32xf32>
    %294 = arith.truncf %168 : vector<8x32xf32> to vector<8x32xbf16>
    %c576 = arith.constant 576 : index
    %c0_83 = arith.constant 0 : index
    %295 = vector.load %arg2[%c576, %c0_83] : memref<768x128xbf16, #tpu.memory_space<vmem>>, vector<32x64xbf16>
    %cst_84 = arith.constant dense<0.000000e+00> : vector<8x64xf32>
    %296 = tpu.matmul %294, %295, %cst_84 {dimension_numbers = #tpu.dot_dimension_numbers<[1], [0], [0], [1], [0, 0, 1, 1], [], []>} : vector<8x32xbf16>, vector<32x64xbf16>, vector<8x64xf32> -> vector<8x64xf32>
    %c72 = arith.constant 72 : index
    %c0_85 = arith.constant 0 : index
    %297 = vector.load %arg3[%c72, %c0_85] : memref<104x128xf32, #tpu.memory_space<vmem>>, vector<1x64xf32>
    %298 = vector.broadcast %297 : vector<1x64xf32> to vector<8x64xf32>
    %299 = arith.addf %296, %298 : vector<8x64xf32>
    %300 = vector.extract_strided_slice %299 {offsets = [0, 0], sizes = [8, 32], strides = [1, 1]} : vector<8x64xf32> to vector<8x32xf32>
    %301 = vector.extract_strided_slice %299 {offsets = [0, 32], sizes = [8, 32], strides = [1, 1]} : vector<8x64xf32> to vector<8x32xf32>
    %302 = vector.extract_strided_slice %293 {offsets = [0, 0], sizes = [8, 16], strides = [1, 1]} : vector<8x32xf32> to vector<8x16xf32>
    %303 = vector.extract_strided_slice %300 {offsets = [0, 0], sizes = [8, 16], strides = [1, 1]} : vector<8x32xf32> to vector<8x16xf32>
    %304 = tpu.transpose %303, [1, 0] : vector<8x16xf32> -> vector<16x8xf32>
    %cst_86 = arith.constant dense<0.000000e+00> : vector<8x8xf32>
    %305 = tpu.matmul %302, %304, %cst_86 {dimension_numbers = #tpu.dot_dimension_numbers<[1], [0], [0], [1], [0, 0, 1, 1], [], []>} : vector<8x16xf32>, vector<16x8xf32>, vector<8x8xf32> -> vector<8x8xf32>
    %cst_87 = arith.constant 2.500000e-01 : f32
    %306 = vector.broadcast %cst_87 : f32 to vector<8x8xf32>
    %307 = arith.mulf %305, %306 : vector<8x8xf32>
    %cst_88 = arith.constant dense<0xFF800000> : vector<8xf32>
    %308 = vector.multi_reduction <maximumf>, %307, %cst_88 [1] : vector<8x8xf32> to vector<8xf32>
    %309 = vector.shape_cast %308 : vector<8xf32> to vector<8x1xf32>
    %310 = vector.broadcast %309 : vector<8x1xf32> to vector<8x8xf32>
    %311 = arith.subf %307, %310 : vector<8x8xf32>
    %312 = math.exp %311 : vector<8x8xf32>
    %cst_89 = arith.constant dense<0.000000e+00> : vector<8xf32>
    %313 = vector.multi_reduction <add>, %312, %cst_89 [1] : vector<8x8xf32> to vector<8xf32>
    %314 = vector.shape_cast %313 : vector<8xf32> to vector<8x1xf32>
    %315 = tpu.reciprocal %314 {approx = true} : vector<8x1xf32> -> vector<8x1xf32>
    %316 = vector.broadcast %315 : vector<8x1xf32> to vector<8x8xf32>
    %317 = arith.mulf %312, %316 : vector<8x8xf32>
    %318 = vector.extract_strided_slice %301 {offsets = [0, 0], sizes = [8, 16], strides = [1, 1]} : vector<8x32xf32> to vector<8x16xf32>
    %cst_90 = arith.constant dense<0.000000e+00> : vector<8x16xf32>
    %319 = tpu.matmul %317, %318, %cst_90 {dimension_numbers = #tpu.dot_dimension_numbers<[1], [0], [0], [1], [0, 0, 1, 1], [], []>} : vector<8x8xf32>, vector<8x16xf32>, vector<8x16xf32> -> vector<8x16xf32>
    %320 = vector.extract_strided_slice %293 {offsets = [0, 16], sizes = [8, 16], strides = [1, 1]} : vector<8x32xf32> to vector<8x16xf32>
    %321 = vector.extract_strided_slice %300 {offsets = [0, 16], sizes = [8, 16], strides = [1, 1]} : vector<8x32xf32> to vector<8x16xf32>
    %322 = tpu.transpose %321, [1, 0] : vector<8x16xf32> -> vector<16x8xf32>
    %cst_91 = arith.constant dense<0.000000e+00> : vector<8x8xf32>
    %323 = tpu.matmul %320, %322, %cst_91 {dimension_numbers = #tpu.dot_dimension_numbers<[1], [0], [0], [1], [0, 0, 1, 1], [], []>} : vector<8x16xf32>, vector<16x8xf32>, vector<8x8xf32> -> vector<8x8xf32>
    %cst_92 = arith.constant 2.500000e-01 : f32
    %324 = vector.broadcast %cst_92 : f32 to vector<8x8xf32>
    %325 = arith.mulf %323, %324 : vector<8x8xf32>
    %cst_93 = arith.constant dense<0xFF800000> : vector<8xf32>
    %326 = vector.multi_reduction <maximumf>, %325, %cst_93 [1] : vector<8x8xf32> to vector<8xf32>
    %327 = vector.shape_cast %326 : vector<8xf32> to vector<8x1xf32>
    %328 = vector.broadcast %327 : vector<8x1xf32> to vector<8x8xf32>
    %329 = arith.subf %325, %328 : vector<8x8xf32>
    %330 = math.exp %329 : vector<8x8xf32>
    %cst_94 = arith.constant dense<0.000000e+00> : vector<8xf32>
    %331 = vector.multi_reduction <add>, %330, %cst_94 [1] : vector<8x8xf32> to vector<8xf32>
    %332 = vector.shape_cast %331 : vector<8xf32> to vector<8x1xf32>
    %333 = tpu.reciprocal %332 {approx = true} : vector<8x1xf32> -> vector<8x1xf32>
    %334 = vector.broadcast %333 : vector<8x1xf32> to vector<8x8xf32>
    %335 = arith.mulf %330, %334 : vector<8x8xf32>
    %336 = vector.extract_strided_slice %301 {offsets = [0, 16], sizes = [8, 16], strides = [1, 1]} : vector<8x32xf32> to vector<8x16xf32>
    %cst_95 = arith.constant dense<0.000000e+00> : vector<8x16xf32>
    %337 = tpu.matmul %335, %336, %cst_95 {dimension_numbers = #tpu.dot_dimension_numbers<[1], [0], [0], [1], [0, 0, 1, 1], [], []>} : vector<8x8xf32>, vector<8x16xf32>, vector<8x16xf32> -> vector<8x16xf32>
    %338 = tpu.concatenate %319, %337 in 1 : vector<8x16xf32>, vector<8x16xf32> -> vector<8x32xf32>
    %339 = arith.truncf %338 : vector<8x32xf32> to vector<8x32xbf16>
    %c608 = arith.constant 608 : index
    %c0_96 = arith.constant 0 : index
    %340 = vector.load %arg2[%c608, %c0_96] : memref<768x128xbf16, #tpu.memory_space<vmem>>, vector<32x32xbf16>
    %cst_97 = arith.constant dense<0.000000e+00> : vector<8x32xf32>
    %341 = tpu.matmul %339, %340, %cst_97 {dimension_numbers = #tpu.dot_dimension_numbers<[1], [0], [0], [1], [0, 0, 1, 1], [], []>} : vector<8x32xbf16>, vector<32x32xbf16>, vector<8x32xf32> -> vector<8x32xf32>
    %c80 = arith.constant 80 : index
    %c0_98 = arith.constant 0 : index
    %342 = vector.load %arg3[%c80, %c0_98] : memref<104x128xf32, #tpu.memory_space<vmem>>, vector<1x32xf32>
    %343 = vector.broadcast %342 : vector<1x32xf32> to vector<8x32xf32>
    %344 = arith.addf %341, %343 : vector<8x32xf32>
    %345 = arith.addf %287, %344 : vector<8x32xf32>
    %cst_99 = arith.constant dense<0.000000e+00> : vector<8xf32>
    %346 = vector.multi_reduction <add>, %345, %cst_99 [1] : vector<8x32xf32> to vector<8xf32>
    %347 = vector.shape_cast %346 : vector<8xf32> to vector<8x1xf32>
    %cst_100 = arith.constant 3.200000e+01 : f32
    %348 = vector.broadcast %cst_100 : f32 to vector<8x1xf32>
    %349 = arith.divf %347, %348 : vector<8x1xf32>
    %350 = vector.broadcast %349 : vector<8x1xf32> to vector<8x32xf32>
    %351 = arith.subf %345, %350 : vector<8x32xf32>
    %352 = arith.mulf %351, %351 : vector<8x32xf32>
    %cst_101 = arith.constant dense<0.000000e+00> : vector<8xf32>
    %353 = vector.multi_reduction <add>, %352, %cst_101 [1] : vector<8x32xf32> to vector<8xf32>
    %354 = vector.shape_cast %353 : vector<8xf32> to vector<8x1xf32>
    %cst_102 = arith.constant 3.200000e+01 : f32
    %355 = vector.broadcast %cst_102 : f32 to vector<8x1xf32>
    %356 = arith.divf %354, %355 : vector<8x1xf32>
    %357 = vector.broadcast %349 : vector<8x1xf32> to vector<8x32xf32>
    %358 = arith.subf %345, %357 : vector<8x32xf32>
    %cst_103 = arith.constant 9.99999996E-13 : f32
    %359 = vector.broadcast %cst_103 : f32 to vector<8x1xf32>
    %360 = arith.addf %356, %359 : vector<8x1xf32>
    %361 = math.rsqrt %360 : vector<8x1xf32>
    %362 = vector.broadcast %361 : vector<8x1xf32> to vector<8x32xf32>
    %363 = arith.mulf %358, %362 : vector<8x32xf32>
    %364 = vector.extract_strided_slice %5 {offsets = [5, 0], sizes = [1, 32], strides = [1, 1]} : vector<8x32xf32> to vector<1x32xf32>
    %365 = vector.broadcast %364 : vector<1x32xf32> to vector<8x32xf32>
    %366 = arith.mulf %363, %365 : vector<8x32xf32>
    %367 = vector.extract_strided_slice %6 {offsets = [5, 0], sizes = [1, 32], strides = [1, 1]} : vector<8x32xf32> to vector<1x32xf32>
    %368 = vector.broadcast %367 : vector<1x32xf32> to vector<8x32xf32>
    %369 = arith.addf %366, %368 : vector<8x32xf32>
    %370 = arith.truncf %369 : vector<8x32xf32> to vector<8x32xbf16>
    %c640 = arith.constant 640 : index
    %c0_104 = arith.constant 0 : index
    %371 = vector.load %arg2[%c640, %c0_104] : memref<768x128xbf16, #tpu.memory_space<vmem>>, vector<32x64xbf16>
    %cst_105 = arith.constant dense<0.000000e+00> : vector<8x64xf32>
    %372 = tpu.matmul %370, %371, %cst_105 {dimension_numbers = #tpu.dot_dimension_numbers<[1], [0], [0], [1], [0, 0, 1, 1], [], []>} : vector<8x32xbf16>, vector<32x64xbf16>, vector<8x64xf32> -> vector<8x64xf32>
    %c88 = arith.constant 88 : index
    %c0_106 = arith.constant 0 : index
    %373 = vector.load %arg3[%c88, %c0_106] : memref<104x128xf32, #tpu.memory_space<vmem>>, vector<1x64xf32>
    %374 = vector.broadcast %373 : vector<1x64xf32> to vector<8x64xf32>
    %375 = arith.addf %372, %374 : vector<8x64xf32>
    %376 = arith.mulf %375, %375 : vector<8x64xf32>
    %377 = arith.mulf %375, %376 : vector<8x64xf32>
    %cst_107 = arith.constant 4.471500e-02 : f32
    %378 = vector.broadcast %cst_107 : f32 to vector<8x64xf32>
    %379 = arith.mulf %378, %377 : vector<8x64xf32>
    %380 = arith.addf %375, %379 : vector<8x64xf32>
    %cst_108 = arith.constant 0.797884583 : f32
    %381 = vector.broadcast %cst_108 : f32 to vector<8x64xf32>
    %382 = arith.mulf %381, %380 : vector<8x64xf32>
    %383 = math.tanh %382 : vector<8x64xf32>
    %cst_109 = arith.constant 1.000000e+00 : f32
    %384 = vector.broadcast %cst_109 : f32 to vector<8x64xf32>
    %385 = arith.addf %384, %383 : vector<8x64xf32>
    %cst_110 = arith.constant 5.000000e-01 : f32
    %386 = vector.broadcast %cst_110 : f32 to vector<8x64xf32>
    %387 = arith.mulf %386, %385 : vector<8x64xf32>
    %388 = arith.mulf %375, %387 : vector<8x64xf32>
    %389 = arith.truncf %388 : vector<8x64xf32> to vector<8x64xbf16>
    %c672 = arith.constant 672 : index
    %c0_111 = arith.constant 0 : index
    %390 = vector.load %arg2[%c672, %c0_111] : memref<768x128xbf16, #tpu.memory_space<vmem>>, vector<64x32xbf16>
    %cst_112 = arith.constant dense<0.000000e+00> : vector<8x32xf32>
    %391 = tpu.matmul %389, %390, %cst_112 {dimension_numbers = #tpu.dot_dimension_numbers<[1], [0], [0], [1], [0, 0, 1, 1], [], []>} : vector<8x64xbf16>, vector<64x32xbf16>, vector<8x32xf32> -> vector<8x32xf32>
    %c96 = arith.constant 96 : index
    %c0_113 = arith.constant 0 : index
    %392 = vector.load %arg3[%c96, %c0_113] : memref<104x128xf32, #tpu.memory_space<vmem>>, vector<1x32xf32>
    %393 = vector.broadcast %392 : vector<1x32xf32> to vector<8x32xf32>
    %394 = arith.addf %391, %393 : vector<8x32xf32>
    %395 = arith.addf %369, %394 : vector<8x32xf32>
    %cst_114 = arith.constant dense<0.000000e+00> : vector<8xf32>
    %396 = vector.multi_reduction <add>, %395, %cst_114 [1] : vector<8x32xf32> to vector<8xf32>
    %397 = vector.shape_cast %396 : vector<8xf32> to vector<8x1xf32>
    %cst_115 = arith.constant 3.200000e+01 : f32
    %398 = vector.broadcast %cst_115 : f32 to vector<8x1xf32>
    %399 = arith.divf %397, %398 : vector<8x1xf32>
    %400 = vector.broadcast %399 : vector<8x1xf32> to vector<8x32xf32>
    %401 = arith.subf %395, %400 : vector<8x32xf32>
    %402 = arith.mulf %401, %401 : vector<8x32xf32>
    %cst_116 = arith.constant dense<0.000000e+00> : vector<8xf32>
    %403 = vector.multi_reduction <add>, %402, %cst_116 [1] : vector<8x32xf32> to vector<8xf32>
    %404 = vector.shape_cast %403 : vector<8xf32> to vector<8x1xf32>
    %cst_117 = arith.constant 3.200000e+01 : f32
    %405 = vector.broadcast %cst_117 : f32 to vector<8x1xf32>
    %406 = arith.divf %404, %405 : vector<8x1xf32>
    %407 = vector.broadcast %399 : vector<8x1xf32> to vector<8x32xf32>
    %408 = arith.subf %395, %407 : vector<8x32xf32>
    %cst_118 = arith.constant 9.99999996E-13 : f32
    %409 = vector.broadcast %cst_118 : f32 to vector<8x1xf32>
    %410 = arith.addf %406, %409 : vector<8x1xf32>
    %411 = math.rsqrt %410 : vector<8x1xf32>
    %412 = vector.broadcast %411 : vector<8x1xf32> to vector<8x32xf32>
    %413 = arith.mulf %408, %412 : vector<8x32xf32>
    %414 = vector.extract_strided_slice %5 {offsets = [6, 0], sizes = [1, 32], strides = [1, 1]} : vector<8x32xf32> to vector<1x32xf32>
    %415 = vector.broadcast %414 : vector<1x32xf32> to vector<8x32xf32>
    %416 = arith.mulf %413, %415 : vector<8x32xf32>
    %417 = vector.extract_strided_slice %6 {offsets = [6, 0], sizes = [1, 32], strides = [1, 1]} : vector<8x32xf32> to vector<1x32xf32>
    %418 = vector.broadcast %417 : vector<1x32xf32> to vector<8x32xf32>
    %419 = arith.addf %416, %418 : vector<8x32xf32>
    %420 = arith.truncf %419 : vector<8x32xf32> to vector<8x32xbf16>
    %c736 = arith.constant 736 : index
    %c0_119 = arith.constant 0 : index
    %421 = vector.load %arg2[%c736, %c0_119] : memref<768x128xbf16, #tpu.memory_space<vmem>>, vector<32x128xbf16>
    %cst_120 = arith.constant dense<0.000000e+00> : vector<8x128xf32>
    %422 = tpu.matmul %420, %421, %cst_120 {dimension_numbers = #tpu.dot_dimension_numbers<[1], [0], [0], [1], [0, 0, 1, 1], [], []>} : vector<8x32xbf16>, vector<32x128xbf16>, vector<8x128xf32> -> vector<8x128xf32>
    %cst_121 = arith.constant dense<0xFF800000> : vector<8xf32>
    %423 = vector.multi_reduction <maximumf>, %422, %cst_121 [1] : vector<8x128xf32> to vector<8xf32>
    %424 = vector.shape_cast %423 : vector<8xf32> to vector<8x1xf32>
    %425 = vector.broadcast %424 : vector<8x1xf32> to vector<8x128xf32>
    %426 = arith.subf %422, %425 : vector<8x128xf32>
    %427 = math.exp %426 : vector<8x128xf32>
    %cst_122 = arith.constant dense<0.000000e+00> : vector<8xf32>
    %428 = vector.multi_reduction <add>, %427, %cst_122 [1] : vector<8x128xf32> to vector<8xf32>
    %429 = vector.shape_cast %428 : vector<8xf32> to vector<8x1xf32>
    %430 = math.log %429 : vector<8x1xf32>
    %431 = arith.addf %430, %424 : vector<8x1xf32>
    %432 = tpu.iota {dimensions = array<i32: 1>} : vector<8x128xi32>
    %433 = vector.broadcast %4 : vector<8x1xi32> to vector<8x128xi32>
    %434 = arith.cmpi eq, %432, %433 : vector<8x128xi32>
    %435 = arith.extui %434 : vector<8x128xi1> to vector<8x128xi32>
    %436 = arith.sitofp %435 : vector<8x128xi32> to vector<8x128xf32>
    %437 = arith.mulf %422, %436 : vector<8x128xf32>
    %cst_123 = arith.constant dense<0.000000e+00> : vector<8xf32>
    %438 = vector.multi_reduction <add>, %437, %cst_123 [1] : vector<8x128xf32> to vector<8xf32>
    %439 = vector.shape_cast %438 : vector<8xf32> to vector<8x1xf32>
    %440 = arith.subf %431, %439 : vector<8x1xf32>
    %441 = vector.shape_cast %440 : vector<8x1xf32> to vector<1x8x1xf32>
    %cst_124 = arith.constant dense<0.000000e+00> : vector<1xf32>
    %442 = vector.multi_reduction <add>, %441, %cst_124 [1, 2] : vector<1x8x1xf32> to vector<1xf32>
    %443 = vector.shape_cast %442 : vector<1xf32> to vector<1x1x1xf32>
    %444 = vector.extract %443[0, 0, 0] : f32 from vector<1x1x1xf32>
    %445 = vector.broadcast %444 : f32 to vector<1x1x128xf32>
    %c0_125 = arith.constant 0 : index
    %c0_126 = arith.constant 0 : index
    %c0_127 = arith.constant 0 : index
    %446 = vector.load %arg4[%c0_125, %c0_126, %c0_127] : memref<1x1x128xf32, #tpu.memory_space<vmem>>, vector<1x1x128xf32>
    tpu.vector_store %arg4[%c0_125, %c0_126, %c0_127], %445 {strides = array<i32>} : memref<1x1x128xf32, #tpu.memory_space<vmem>>, vector<1x1x128xf32>,
    return
  }
  func.func @transform_0(%arg0: i32) -> (i32, i32, i32) {
    %c0_i32 = arith.constant 0 : i32
    %c0_i32_0 = arith.constant 0 : i32
    %c0_i32_1 = arith.constant 0 : i32
    return %arg0, %c0_i32, %c0_i32_0 : i32, i32, i32
  }
  func.func @transform_1(%arg0: i32) -> (i32, i32) {
    %c0_i32 = arith.constant 0 : i32
    %c0_i32_0 = arith.constant 0 : i32
    %c0_i32_1 = arith.constant 0 : i32
    return %c0_i32, %c0_i32_0 : i32, i32
  }
  func.func @transform_2(%arg0: i32) -> (i32, i32) {
    %c0_i32 = arith.constant 0 : i32
    %c0_i32_0 = arith.constant 0 : i32
    %c0_i32_1 = arith.constant 0 : i32
    return %c0_i32, %c0_i32_0 : i32, i32
  }
  func.func @transform_3(%arg0: i32) -> (i32, i32, i32) {
    %c0_i32 = arith.constant 0 : i32
    %c0_i32_0 = arith.constant 0 : i32
    %c0_i32_1 = arith.constant 0 : i32
    return %arg0, %c0_i32, %c0_i32_0 : i32, i32, i32
  }
}

</mosaic_0001>

<bundles_post_ra>
// kernel: bert_encdec_loss.1
= control target key start
LH: loop header
LB: loop body
LE: loop exit
PB: predicated region body
PF: predicated region fallthrough
CT: control target
= control target key end

     0   :  { %8 = vsyncpa [#allocation3], 0  ;;  %s3537_s0 = inlined_call_operand.vmem [shape: s32[2,8,3], index: 0, kind: input, shape index: {}]   ;;  %s3538_s1 = inlined_call_operand.hbm [shape: bf16[768,128], index: 1, kind: input, shape index: {}]   ;;  %s3539_s2 = inlined_call_operand.hbm [shape: f32[104,128], index: 2, kind: input, shape index: {}]   ;;  %s3540_s3 = inlined_call_operand.vmem [shape: f32[2,1,128], index: 3, kind: output, shape index: {}]  }
   0x1   :  { %9 = vsyncpa [#allocation5], 0  ;;  %s3180_s12 = smov 0  }
   0x2 LB: > { %s3142_s13 = smov [#allocation2]   ;;  %s3186_s15 = sadd.s32 4294967295, %s3140_s12   ;;  %s3140_s12 = sphi %s3180_s12, %s15_s12  }
   0x3   : > { %s126_s14 = sshll.u32 %s3142_s13, 4  ;;  %p2538_p0 = scmp.ge.s32.totalorder %s3140_s12, 1  ;;  %s127_s14 = int_to_ptr.vmem [resolvable:$true] %s126_s14 }
   0x4   : > { %p114_p1 = scmp.lt.s32.totalorder %s3140_s12, 3  ;;  %p3541_p3 = scmp.eq.s32.totalorder %s3186_s15, 0 }
   0x5   : > { %s3143_s17 = smov [#allocation4]   ;;  %s3070_s22 = scalar_lea.hbm %s3538_s1, 6144 }
   0x6   : > { %p3190_p2 = pnand %p2538_p0, %p114_p1  ;;  %s139_s18 = sshll.u32 %s3143_s17, 4  ;;  %s3203_s18 = int_to_ptr.vmem [resolvable:$true] %s139_s18 }
   0x7   : > { %p3071_p6 = scmp.ne.s32.totalorder %s3538_s1, %s3070_s22  ;;  %p3077_p10 = scmp.lt.u32.totalorder %s3070_s22, %s3538_s1 }
   0x8   : > { %s3543_s16 = scalar_select %p3190_p2, 1, 0 }
   0x9   : > { %p2936_p4 = pneg %p3190_p2 }
   0xb   : > { %p3199_p5 = pnand %p3541_p3, %p2936_p4 }
   0xd   : > { %p3072_p7 = pneg %p3199_p5 }
   0xf   : > { %p3073_p8 = pnand %p3072_p7, %p3071_p6 }
  0x11   : > { %p3074_p9 = pneg %p3073_p8 }
  0x13   : > { %p3079_p11 = pnand %p3077_p10, %p3074_p9 }
  0x15   : > { %3082 = shalt.err (!%p3079_p11)
}
  0x16   : > { %s3083_s27 = scalar_lea.vmem %s127_s14, 6144  ;;  %p3091_p1 = scmp.lt.s32.totalorder %s127_s14, %s127_s14 }
  0x17   : > { %p3084_p12 = scmp.ne.s32.totalorder %s127_s14, %s3083_s27  ;;  %p3092_p4 = scmp.lt.s32.totalorder %s3083_s27, %s3083_s27 }
  0x19   : > { %p3086_p13 = pnand %p3084_p12, %p3072_p7  ;;  %p3093_p3 = por %p3092_p4, %p3091_p1 }
  0x1b   : > { %p3087_p0 = pneg %p3086_p13 }
  0x1d   : > { %p3094_p2 = pnand %p3093_p3, %p3087_p0 }
  0x1f   : > { %3097 = shalt.err (!%p3094_p2)
}
  0x20   : > { %s3144_s28 = smov 64   ;;  %s3145_s29 = smov 4  }
  0x21   : > { %2939 = dma.hbm_to_vmem [thread:$0]  (!%p3199_p5), %s3538_s1, 6144, %s127_s14, [#allocation3], %s3144_s28, %s3144_s28, %s3145_s29  }
  0x22   : > { %s3098_s7 = scalar_lea.hbm %s3539_s2, 1664 }
  0x23   : > { %p3099_p6 = scmp.ne.s32.totalorder %s3539_s2, %s3098_s7  ;;  %p3105_p8 = scmp.lt.u32.totalorder %s3098_s7, %s3539_s2 }
  0x25   : > { %p3101_p2 = pnand %p3099_p6, %p3072_p7 }
  0x27   : > { %p3102_p3 = pneg %p3101_p2 }
  0x29   : > { %p3107_p9 = pnand %p3105_p8, %p3102_p3 }
  0x2b   : > { %3110 = shalt.err (!%p3107_p9)
}
  0x2c   : > { %s3111_s13 = scalar_lea.vmem %s3203_s18, 1664  ;;  %p3119_p13 = scmp.lt.s32.totalorder %s3203_s18, %s3203_s18 }
  0x2d   : > { %p3112_p10 = scmp.ne.s32.totalorder %s3203_s18, %s3111_s13  ;;  %p3120_p0 = scmp.lt.s32.totalorder %s3111_s13, %s3111_s13 }
  0x2f   : > { %p3114_p11 = pnand %p3112_p10, %p3072_p7  ;;  %p3121_p1 = por %p3120_p0, %p3119_p13 }
  0x31   : > { %p3115_p12 = pneg %p3114_p11 }
  0x33   : > { %p3122_p4 = pnand %p3121_p1, %p3115_p12 }
  0x35   : > { %3125 = shalt.err (!%p3122_p4)
}
  0x36   : > { %s3146_s14 = smov 128   ;;  %s3147_s17 = smov 8  }
  0x37   : > { %2942 = dma.hbm_to_vmem [thread:$0]  (!%p3199_p5), %s3539_s2, 1664, %s3203_s18, [#allocation5], %s3146_s14, %s3146_s14, %s3147_s17  }
  0x38   : > { %p3545_p6 = scmp.ne.s32.totalorder %s3543_s16, 0 }
  0x39   : > { %p3546_p7 = scmp.eq.s32.totalorder (!%p3545_p6), %s3186_s15, 0 }
  0x3a   : > { %162 = sbr.rel (%p3545_p6) target bundleno = 9031 (0x2347), region = 32 }
  0x41   : > { %3131 = dma.done.wait (%p3546_p7), [#allocation3], 6144   ;;  %p3547_p2 = pmov %p3546_p7 }
  0x43   : > { %3133 = vsyncadd (%p3547_p2), [#allocation3], 4294961152  ;;  %p3548_p3 = pmov %p3547_p2 }
  0x44   : > { %p3549_p8 = pmov %p3547_p2 }
  0x45   : > { %3135 = dma.done.wait (%p3548_p3), [#allocation5], 1664  }
  0x46   : > { %3137 = vsyncadd (%p3549_p8), [#allocation5], 4294965632  ;;  %p187_p9 = scmp.lt.s32.totalorder %s3186_s15, 1  ;;  %v3148_v0 = vmov 0   ;;  %v3149_v1 = vmov 0.0   ;;  %v2977_v3 = vld [vmem:[#allocation2] sm:$0xff]   ;;  %v198_v11 = vlaneseq }
  0x47   : > { %2973 = vset.pattern.permute.xlu0 %v3148_v0  ;;  %2722 = vmatprep.subr.bf16.mxu0 %v3149_v1  ;;  %vm3150_vm0 = vmmov 0   ;;  %v2978_v4 = vld [vmem:[#allocation2 + $0x8] sm:$0xff]   ;;  %v2979_v5 = vld [vmem:[#allocation2 + $0x10] sm:$0xff]   ;;  %v2980_v6 = vld [vmem:[#allocation2 + $0x18] sm:$0xff]   ;;  %v3151_v14 = vmov 1.0|1.0  }
  0x48   : > { %s3551_s15 = smov (!%p187_p9, %s3186_s15), 1  ;;  %2742 = vmatprep.subr.bf16.mxu1 %v3149_v1  ;;  %2738 = vmatprep.mubr.msk.bf16.mxu0 %vm3150_vm0, %v3149_v1  ;;  %v2981_v7 = vld [vmem:[#allocation2 + $0x20] sm:$0xff]   ;;  %v2982_v8 = vld [vmem:[#allocation2 + $0x28] sm:$0xff]   ;;  %v2983_v9 = vld [vmem:[#allocation2 + $0x30] sm:$0xff]   ;;  %v3290_v12 = vand.u32 127, %v198_v11  ;;  %vm313_vm3 = vcmask 261120  }
  0x49   : > { %s2545_s16 = sshll.u32 %s3551_s15, 3  ;;  %2746 = vmatprep.mubr.msk.bf16.mxu1 %vm3150_vm0, %v3149_v1  ;;  %2723 = vmatpush3.bf16.msra.mxu0 %v2977_v3  ;;  %v2984_v10 = vld [vmem:[#allocation2 + $0x38] sm:$0xff]   ;;  %v3296_v15 = vld [vmem:[#allocation2 + $0x40] ss:$80 sps:$4 sm:$0xff]   ;;  %v2986_v29 = vld [vmem:[#allocation2 + $0xa8] sm:$0xff]   ;;  %v3303_v33 = vshrl.u32 %v198_v11, 7  ;;  %s193_s4 = scalar_lea.vmem %s3540_s3, %s3551_s15 }
  0x4a   : > { %s3272_s22 = scalar_lea.vmem %s3537_s0, %s2545_s16  ;;  %2724 = vmatprep.subr.bf16.mxu0 %v3149_v1  ;;  %v224_v16 = vunpack.c.l.bf16 %v3296_v15  ;;  %v2985_v28 = vld [vmem:[#allocation2 + $0xa0] sm:$0xff]   ;;  %v3308_v36 = vld [vmem:[#allocation4 + $0x8] sm:$0xff]  ;;  %v2557_v44 = vld [vmem:[#allocation4 + $0x10] ss:$0 sm:$0xff]  ;;  %s3152_s23 = smov 64   ;;  %vm406_vm4 = vcmask 130048  }
  0x4b   : > { %v3275_v2 = vld [vmem:[%s3272_s22] sm:$0xff]  ;;  %2743 = vmatpush3.bf16.msra.mxu1 %v2985_v28  ;;  %v330_v34 = vsub.s32 0, %v3303_v33  ;;  %s3153_s24 = smov 96   ;;  %vm482_vm5 = vcmask 64512   ;;  %s3154_s25 = smov 80   ;;  %vm942_vm8 = vcmask 523264   ;;  %vm1213_vm9 = vcmp.ge.s32.totalorder %v3303_v33, %v3290_v12 }
  0x4c   : > { %201 = vperm.xlu0 %2973, %v3275_v2   ;;  %2744 = vmatprep.subr.bf16.mxu1 %v3149_v1  ;;  %v3306_v35 = vld [vmem:[#allocation4] sm:$0xff]  ;;  %s3155_s26 = smov 112   ;;  %s3156_s27 = smov 48   ;;  %vm2454_vm11 = vcmask 7168  }
  0x4d   : > { %2725 = vmatpush3.bf16.msra.mxu0 %v2978_v4  ;;  %v331_v37 = vrot.slane %v3306_v35, %v330_v34  ;;  %v336_v40 = vrot.slane %v3308_v36, %v330_v34  ;;  %s3157_s28 = smov 16  }
  0x4e   : > { %2726 = vmatprep.subr.bf16.mxu0 %v3149_v1 }
  0x4f   : > { %2745 = vmatpush3.bf16.msra.mxu1 %v2986_v29  ;;  %v2567_v29 = vld [vmem:[#allocation4 + $0x18] ss:$0 sm:$0xff] }
  0x50   : > { %2750 = vmatprep.subr.mxu1 %v3149_v1 }
  0x51   : > { %2727 = vmatpush3.bf16.msra.mxu0 %v2979_v5 }
  0x52   : > { %2728 = vmatprep.subr.bf16.mxu0 %v3149_v1 }
  0x55   : > { %2729 = vmatpush3.bf16.msra.mxu0 %v2980_v6 }
  0x56   : > { %2730 = vmatprep.subr.bf16.mxu0 %v3149_v1 }
  0x59   : > { %2731 = vmatpush3.bf16.msra.mxu0 %v2981_v7 }
  0x5a   : > { %2732 = vmatprep.subr.bf16.mxu0 %v3149_v1 }
  0x5d   : > { %2733 = vmatpush3.bf16.msra.mxu0 %v2982_v8 }
  0x5e   : > { %2734 = vmatprep.subr.bf16.mxu0 %v3149_v1 }
  0x61   : > { %2735 = vmatpush3.bf16.msra.mxu0 %v2983_v9 }
  0x62   : > { %2736 = vmatprep.subr.bf16.mxu0 %v3149_v1 }
  0x65   : > { %2737 = vmatpush3.bf16.msra.mxu0 %v2984_v10 }
  0x66   : > { %2778 = vmatprep.subr.bf16.mxu0 %v3149_v1 }
  0xcb   : > { %v202_v13 = vpop.permute.xlu0 %201 }
  0xcc   : > { %vm203_vm1 = vcmp.eq.s32.totalorder %v3290_v12, %v202_v13 }
  0xcd   : > { %vm2555_vm2 = vmpackc.low %vm203_vm1, %vm203_vm1 }
  0xce   : > { %2739 = vmatmul.mubr.msk.bf16.vlgmr.msra.gmra.mrb[0].mxu0 %vm2555_vm2, %v3151_v14 }
  0xcf   : > { %2782 = vmatprep.mubr.msk.bf16.mxu0 %vm3150_vm0, %v3149_v1 }
 0x1a1   : > { %v307_v17 = vpop.f32.mrb[0].mxu0 }
 0x1a2   : > { %v308_v18 = vadd.f32 %v307_v17, %v224_v16  ;;  %v2740_v19 = vpop.f32.mrb[1].mxu0 }
 0x1a3   : > { %v310_v20 = vpop.f32.mrb[2].mxu0 }
 0x1a4   : > { %v2741_v21 = vpop.f32.mrb[3].mxu0  ;;  %v314_v22 = vsel %vm313_vm3, %v308_v18, 0.0 }
 0x1a5   : > { %315 = vadd.xlane.f32.xlu0 %v314_v22  ;;  %v2987_v22 = vld [vmem:[#allocation2 + $0xb0] sm:$0xff]  }
 0x232   : > { %v316_v23 = vpop.xlane.xlu0 %315 }
 0x233   : > { %v318_v24 = vmul.f32 0.03125, %v316_v23  ;;  %v2988_v23 = vld [vmem:[#allocation2 + $0xb8] sm:$0xff]  }
 0x235   : > { %v319_v25 = vsub.f32 %v308_v18, %v318_v24 }
 0x237   : > { %v320_v26 = vmul.f32 %v319_v25, %v319_v25 }
 0x239   : > { %v321_v27 = vsel %vm313_vm3, %v320_v26, 0.0 }
 0x23a   : > { %322 = vadd.xlane.f32.xlu1 %v321_v27 }
 0x2c7   : > { %v323_v30 = vpop.xlane.xlu1 %322 }
 0x2c8   : > { %v324_v31 = vmul.f32 0.03125, %v323_v30 }
 0x2ca   : > { %v325_v32 = vadd.f32 1e-12, %v324_v31 }
 0x2cc   : > { %3021 = vrsqrt.f32 %v325_v32 }
 0x2d6   : > { %v3022_v38 = vpop.eup %3021 }
 0x2d7   : > { %v327_v39 = vmul.f32 %v3022_v38, %v319_v25 }
 0x2d9   : > { %v332_v41 = vmul.f32 %v331_v37, %v327_v39 }
 0x2db   : > { %v3312_v42 = vadd.f32 %v336_v40, %v332_v41  ;;  %v3158_v40 = vmov 1  }
 0x2dc   : > { %2974 = vset.pattern.permute.xlu0 %v3158_v40 }
 0x2dd   : > { %v338_v43 = vpack.c.bf16 %v3312_v42, %v3312_v42 }
 0x2df   : > { %2747 = vmatmul.mubr.msk.bf16.vlgmr.msra.gmra.mrb[0].mxu1 %vm313_vm3, %v338_v43 }
 0x2e0   : > { %2752 = vmatprep.mubr.msk.f32.mxu1 %vm3150_vm0, %v3149_v1 }
 0x3b2   : > { %v397_v45 = vpop.f32.mrb[0].mxu1 }
 0x3b3   : > { %v398_v46 = vadd.f32 %v2557_v44, %v397_v45  ;;  %v2748_v47 = vpop.f32.mrb[1].mxu1 }
 0x3b4   : > { %v400_v48 = vpop.f32.mrb[2].mxu1  ;;  %v2989_v47 = vld [vmem:[#allocation2 + $0xc0] sm:$0xff]  }
 0x3b5   : > { %494 = vrot.lane.b32.xlu0 %v398_v46, %s3152_s23  ;;  %404 = vrot.lane.b32.xlu1 %v398_v46, %s3153_s24  ;;  %v2749_v49 = vpop.f32.mrb[3].mxu1  ;;  %v2990_v48 = vld [vmem:[#allocation2 + $0xc8] sm:$0xff]  }
 0x3b6   : > { %2779 = vmatpush3.bf16.msra.mxu0 %v2989_v47 }
 0x3b7   : > { %2780 = vmatprep.subr.bf16.mxu0 %v3149_v1 }
 0x3ba   : > { %2781 = vmatpush3.bf16.msra.mxu0 %v2990_v48 }
 0x3bb   : > { %2798 = vmatprep.subr.bf16.mxu0 %v3149_v1 }
 0x427   : > { %v405_v50 = vpop.permute.xlu1 %404  ;;  %v495_v51 = vpop.permute.xlu0 %494 }
 0x428   : > { %2751 = vmatpush3.xpose.msk.msra.mxu1 %vm406_vm4, %v405_v50 }
 0x429   : > { %2755 = vmatprep.subr.mxu1 %v3149_v1 }
 0x42b   : > { %2753 = vmatmul.mubr.msk.f32.vlgmr.msra.gmra.mrb[4].mxu1 %vm406_vm4, %v398_v46 }
 0x42c   : > { %2756 = vmatpush3.msra.mxu1 %v495_v51  ;;  %2757 = vmatprep.mubr.msk.f32.mxu1 %vm3150_vm0, %v3149_v1 }
 0x42d   : > { %2760 = vmatprep.subr.mxu1 %v3149_v1 }
 0x4fe   : > { %v477_v52 = vpop.f32.mrb[4].mxu1 }
 0x4ff   : > { %v481_v53 = vmul.f32 0.25, %v477_v52  ;;  %v2754_v54 = vpop.f32.mrb[5].mxu1 }
 0x501   : > { %v483_v55 = vsel %vm482_vm5, %v481_v53, -inf }
 0x502   : > { %484 = vmax.xlane.f32.xlu1 %v483_v55 }
 0x513   : > { %572 = vrot.lane.b32.xlu1 %v398_v46, %s3154_s25 }
 0x58f   : > { %v485_v56 = vpop.xlane.xlu1 %484 }
 0x590   : > { %v486_v57 = vsub.f32 %v481_v53, %v485_v56 }
 0x592   : > { %v487_v58 = vmul.f32 1.442695, %v486_v57  ;;  %v2991_v57 = vld [vmem:[#allocation2 + $0x50] sm:$0xff]  }
 0x593   : > { %v573_v0 = vpop.permute.xlu1 %572 }
 0x594   : > { %3023 = vpow2.f32 %v487_v58 }
 0x59e   : > { %v3024_v59 = vpop.eup %3023 }
 0x59f   : > { %v489_v60 = vsel %vm482_vm5, %v3024_v59, 0.0 }
 0x5a0   : > { %490 = vadd.xlane.f32.xlu0 %v489_v60  ;;  %v2993_v60 = vld [vmem:[#allocation2 + $0x60] sm:$0xff]  }
 0x5b6   : > { %570 = vrot.lane.b32.xlu0 %v398_v46, %s3155_s26 }
 0x62d   : > { %v491_v61 = vpop.xlane.xlu0 %490 }
 0x62e   : > { %3025 = vrcp.f32 %v491_v61  ;;  %v2994_v61 = vld [vmem:[#allocation2 + $0x68] sm:$0xff]  }
 0x631   : > { %v571_v3 = vpop.permute.xlu0 %570 }
 0x638   : > { %v3026_v62 = vpop.eup %3025 }
 0x639   : > { %v493_v63 = vmul.f32 %v3026_v62, %v3024_v59  ;;  %v2992_v59 = vld [vmem:[#allocation2 + $0x58] sm:$0xff]   ;;  %v2995_v62 = vld [vmem:[#allocation2 + $0x70] sm:$0xff]  }
 0x63b   : > { %2758 = vmatmul.mubr.msk.f32.vlgmr.msra.gmra.mrb[6].mxu1 %vm482_vm5, %v493_v63  ;;  %v2996_v63 = vld [vmem:[#allocation2 + $0x78] sm:$0xff]  }
 0x63c   : > { %2761 = vmatpush3.xpose.msk.msra.mxu1 %vm406_vm4, %v573_v0  ;;  %2762 = vmatprep.mubr.msk.f32.mxu1 %vm3150_vm0, %v3149_v1  ;;  %v2997_v0 = vld [vmem:[#allocation2 + $0x80] sm:$0xff]  }
 0x63d   : > { %2765 = vmatprep.subr.mxu1 %v3149_v1 }
 0x63f   : > { %2763 = vmatmul.mubr.msk.f32.vlgmr.msra.gmra.mrb[8].mxu1 %vm406_vm4, %v571_v3 }
 0x640   : > { %2767 = vmatprep.mubr.msk.f32.mxu1 %vm3150_vm0, %v3149_v1 }
 0x70e   : > { %v566_v4 = vpop.f32.mrb[6].mxu1 }
 0x70f   : > { %v2759_v5 = vpop.f32.mrb[7].mxu1 }
 0x710   : > { %v2999_v5 = vld [vmem:[#allocation2 + $0xd0] sm:$0xff]  }
 0x712   : > { %v644_v6 = vpop.f32.mrb[8].mxu1 }
 0x713   : > { %v648_v7 = vmul.f32 0.25, %v644_v6  ;;  %v2764_v8 = vpop.f32.mrb[9].mxu1  ;;  %v3000_v6 = vld [vmem:[#allocation2 + $0xd8] sm:$0xff]  }
 0x714   : > { %v3002_v8 = vld [vmem:[#allocation2 + $0xe8] sm:$0xff]  }
 0x715   : > { %v649_v9 = vsel %vm482_vm5, %v648_v7, -inf }
 0x716   : > { %650 = vmax.xlane.f32.xlu0 %v649_v9 }
 0x72c   : > { %660 = vrot.lane.b32.xlu0 %v398_v46, %s3156_s27 }
 0x7a3   : > { %v651_v10 = vpop.xlane.xlu0 %650 }
 0x7a4   : > { %v652_v11 = vsub.f32 %v648_v7, %v651_v10  ;;  %v3001_v7 = vld [vmem:[#allocation2 + $0xe0] sm:$0xff]  }
 0x7a6   : > { %v653_v13 = vmul.f32 1.442695, %v652_v11 }
 0x7a7   : > { %v661_v16 = vpop.permute.xlu0 %660 }
 0x7a8   : > { %3027 = vpow2.f32 %v653_v13  ;;  %2766 = vmatpush3.msra.mxu1 %v661_v16 }
 0x7a9   : > { %2770 = vmatprep.subr.bf16.mxu1 %v3149_v1 }
 0x7b2   : > { %v3028_v17 = vpop.eup %3027 }
 0x7b3   : > { %v655_v18 = vsel %vm482_vm5, %v3028_v17, 0.0 }
 0x7b4   : > { %656 = vadd.xlane.f32.xlu1 %v655_v18 }
 0x841   : > { %v657_v19 = vpop.xlane.xlu1 %656 }
 0x842   : > { %3029 = vrcp.f32 %v657_v19 }
 0x84c   : > { %v3030_v20 = vpop.eup %3029 }
 0x84d   : > { %v659_v21 = vmul.f32 %v3030_v20, %v3028_v17 }
 0x84f   : > { %2768 = vmatmul.mubr.msk.f32.vlgmr.msra.gmra.mrb[10].mxu1 %vm482_vm5, %v659_v21 }
 0x850   : > { %2774 = vmatprep.mubr.msk.bf16.mxu1 %vm3150_vm0, %v3149_v1  ;;  %2771 = vmatpush3.bf16.msra.mxu1 %v2987_v22 }
 0x851   : > { %2772 = vmatprep.subr.bf16.mxu1 %v3149_v1 }
 0x854   : > { %2773 = vmatpush3.bf16.msra.mxu1 %v2988_v23 }
 0x855   : > { %2786 = vmatprep.subr.bf16.mxu1 %v3149_v1 }
 0x922   : > { %v732_v24 = vpop.f32.mrb[10].mxu1 }
 0x923   : > { %737 = vrot.lane.b32.xlu1 %v732_v24, %s3157_s28  ;;  %v2769_v25 = vpop.f32.mrb[11].mxu1 }
 0x995   : > { %v738_v26 = vpop.permute.xlu1 %737 }
 0x996   : > { %v740_v27 = vsel %vm406_vm4, %v566_v4, %v738_v26  ;;  %v2998_v4 = vld [vmem:[#allocation2 + $0x88] sm:$0xff]   ;;  %v1034_v26 = vunpack.c.h.bf16 %v3296_v15 }
 0x997   : > { %v741_v28 = vpack.c.bf16 %v740_v27, %v740_v27 }
 0x999   : > { %2775 = vmatmul.mubr.msk.bf16.vlgmr.msra.gmra.mrb[12].mxu1 %vm313_vm3, %v741_v28 }
 0x99a   : > { %2794 = vmatprep.mubr.msk.bf16.mxu1 %vm3150_vm0, %v3149_v1  ;;  %2787 = vmatpush3.bf16.msra.mxu1 %v2999_v5 }
 0x99b   : > { %2788 = vmatprep.subr.bf16.mxu1 %v3149_v1 }
 0x99e   : > { %2789 = vmatpush3.bf16.msra.mxu1 %v3000_v6 }
 0x99f   : > { %2790 = vmatprep.subr.bf16.mxu1 %v3149_v1 }
 0x9a2   : > { %2791 = vmatpush3.bf16.msra.mxu1 %v3001_v7 }
 0x9a3   : > { %2792 = vmatprep.subr.bf16.mxu1 %v3149_v1 }
 0x9a6   : > { %2793 = vmatpush3.bf16.msra.mxu1 %v3002_v8 }
 0x9a7   : > { %2818 = vmatprep.subr.bf16.mxu1 %v3149_v1 }
 0xa6c   : > { %v800_v30 = vpop.f32.mrb[12].mxu1 }
 0xa6d   : > { %v801_v31 = vadd.f32 %v2567_v29, %v800_v30  ;;  %v2776_v32 = vpop.f32.mrb[13].mxu1 }
 0xa6e   : > { %v803_v34 = vpop.f32.mrb[14].mxu1 }
 0xa6f   : > { %v2777_v37 = vpop.f32.mrb[15].mxu1  ;;  %v806_v38 = vadd.f32 %v801_v31, %v3312_v42 }
 0xa71   : > { %v807_v39 = vsel %vm313_vm3, %v806_v38, 0.0 }
 0xa72   : > { %808 = vadd.xlane.f32.xlu0 %v807_v39 }
 0xa88   : > { %1011 = vperm.xlu0 %2974, %v3275_v2   ;;  %v822_v2 = vsub.s32 1, %v3303_v33 }
 0xa8a   : > { %v823_v51 = vrot.slane %v3306_v35, %v822_v2  ;;  %v828_v54 = vrot.slane %v3308_v36, %v822_v2 }
 0xaff   : > { %v809_v41 = vpop.xlane.xlu0 %808 }
 0xb00   : > { %v810_v43 = vmul.f32 0.03125, %v809_v41  ;;  %v3003_v41 = vld [vmem:[#allocation2 + $0xf0] sm:$0xff]  }
 0xb02   : > { %v811_v44 = vsub.f32 %v806_v38, %v810_v43  ;;  %v3004_v43 = vld [vmem:[#allocation2 + $0xf8] sm:$0xff]  }
 0xb04   : > { %v812_v45 = vmul.f32 %v811_v44, %v811_v44 }
 0xb06   : > { %v813_v46 = vsel %vm313_vm3, %v812_v45, 0.0 }
 0xb07   : > { %814 = vadd.xlane.f32.xlu1 %v813_v46  ;;  %v1012_v3 = vpop.permute.xlu0 %1011 }
 0xb08   : > { %vm1013_vm6 = vcmp.eq.s32.totalorder %v3290_v12, %v1012_v3 }
 0xb09   : > { %vm2590_vm7 = vmpackc.low %vm1013_vm6, %vm1013_vm6 }
 0xb94   : > { %v815_v42 = vpop.xlane.xlu1 %814 }
 0xb95   : > { %v816_v49 = vmul.f32 0.03125, %v815_v42 }
 0xb97   : > { %v817_v50 = vadd.f32 1e-12, %v816_v49 }
 0xb99   : > { %3031 = vrsqrt.f32 %v817_v50  ;;  %v1138_v50 = vsub.s32 3, %v3303_v33 }
 0xb9b   : > { %v1139_v2 = vrot.slane %v3306_v35, %v1138_v50 }
 0xba3   : > { %v3032_v52 = vpop.eup %3031 }
 0xba4   : > { %v819_v53 = vmul.f32 %v3032_v52, %v811_v44 }
 0xba6   : > { %v824_v55 = vmul.f32 %v823_v51, %v819_v53  ;;  %v1144_v53 = vrot.slane %v3308_v36, %v1138_v50 }
 0xba8   : > { %v3362_v56 = vadd.f32 %v828_v54, %v824_v55 }
 0xbaa   : > { %v830_v58 = vpack.c.bf16 %v3362_v56, %v3362_v56 }
 0xbac   : > { %2783 = vmatmul.mubr.msk.bf16.vlgmr.msra.gmra.mrb[4].mxu0 %vm313_vm3, %v830_v58  ;;  %v2592_v58 = vld [vmem:[#allocation4 + $0x30] ss:$0 sm:$0xff] }
 0xbad   : > { %2799 = vmatpush3.bf16.msra.mxu0 %v2991_v57  ;;  %2814 = vmatprep.mubr.msk.bf16.mxu0 %vm3150_vm0, %v3149_v1 }
 0xbae   : > { %2800 = vmatprep.subr.bf16.mxu0 %v3149_v1 }
 0xbb1   : > { %2801 = vmatpush3.bf16.msra.mxu0 %v2992_v59 }
 0xbb2   : > { %2802 = vmatprep.subr.bf16.mxu0 %v3149_v1 }
 0xbb5   : > { %2803 = vmatpush3.bf16.msra.mxu0 %v2993_v60 }
 0xbb6   : > { %2804 = vmatprep.subr.bf16.mxu0 %v3149_v1 }
 0xbb9   : > { %2805 = vmatpush3.bf16.msra.mxu0 %v2994_v61 }
 0xbba   : > { %2806 = vmatprep.subr.bf16.mxu0 %v3149_v1 }
 0xbbd   : > { %2807 = vmatpush3.bf16.msra.mxu0 %v2995_v62 }
 0xbbe   : > { %2808 = vmatprep.subr.bf16.mxu0 %v3149_v1 }
 0xbc1   : > { %2809 = vmatpush3.bf16.msra.mxu0 %v2996_v63 }
 0xbc2   : > { %2810 = vmatprep.subr.bf16.mxu0 %v3149_v1 }
 0xbc5   : > { %2811 = vmatpush3.bf16.msra.mxu0 %v2997_v0 }
 0xbc6   : > { %2812 = vmatprep.subr.bf16.mxu0 %v3149_v1 }
 0xbc9   : > { %2813 = vmatpush3.bf16.msra.mxu0 %v2998_v4 }
 0xbca   : > { %2841 = vmatprep.subr.mxu0 %v3149_v1 }
 0xbcc   : > { %2815 = vmatmul.mubr.msk.bf16.vlgmr.msra.gmra.mrb[8].mxu0 %vm2590_vm7, %v3151_v14  ;;  %v2571_v14 = vld [vmem:[#allocation4 + $0x20] ss:$0 sm:$0xff] }
 0xbcd   : > { %2843 = vmatprep.mubr.msk.f32.mxu0 %vm3150_vm0, %v3149_v1 }
 0xc7f   : > { %v889_v9 = vpop.f32.mrb[4].mxu0 }
 0xc80   : > { %v890_v10 = vadd.f32 %v2571_v14, %v889_v9  ;;  %v2784_v11 = vpop.f32.mrb[5].mxu0 }
 0xc81   : > { %v892_v13 = vpop.f32.mrb[6].mxu0 }
 0xc82   : > { %v895_v16 = vmul.f32 %v890_v10, %v890_v10  ;;  %v2785_v17 = vpop.f32.mrb[7].mxu0 }
 0xc84   : > { %v896_v18 = vmul.f32 %v895_v16, %v890_v10 }
 0xc86   : > { %v897_v19 = vmul.f32 0.044715, %v896_v18 }
 0xc88   : > { %v898_v20 = vadd.f32 %v897_v19, %v890_v10 }
 0xc8a   : > { %v899_v21 = vmul.f32 0.7978846, %v898_v20 }
 0xc8c   : > { %3033 = vtanh.f32 %v899_v21 }
 0xc96   : > { %v3034_v22 = vpop.eup %3033 }
 0xc97   : > { %v901_v23 = vadd.f32 1.0, %v3034_v22 }
 0xc99   : > { %v902_v24 = vmul.f32 0.5, %v901_v23 }
 0xc9b   : > { %v903_v25 = vmul.f32 %v902_v24, %v890_v10 }
 0xc9d   : > { %v904_v27 = vpack.c.bf16 %v903_v25, %v903_v25 }
 0xc9f   : > { %v1117_v28 = vpop.f32.mrb[8].mxu0  ;;  %2795 = vmatmul.mubr.msk.bf16.vlgmr.msra.gmra.mrb[16].mxu1 %vm942_vm8, %v904_v27 }
 0xca0   : > { %v1118_v29 = vadd.f32 %v1117_v28, %v1034_v26  ;;  %v2816_v30 = vpop.f32.mrb[9].mxu0  ;;  %2822 = vmatprep.mubr.msk.bf16.mxu1 %vm3150_vm0, %v3149_v1  ;;  %2819 = vmatpush3.bf16.msra.mxu1 %v3003_v41 }
 0xca1   : > { %v1120_v31 = vpop.f32.mrb[10].mxu0  ;;  %2820 = vmatprep.subr.bf16.mxu1 %v3149_v1 }
 0xca2   : > { %v2817_v32 = vpop.f32.mrb[11].mxu0  ;;  %v1123_v34 = vsel %vm313_vm3, %v1118_v29, 0.0 }
 0xca3   : > { %1124 = vadd.xlane.f32.xlu1 %v1123_v34 }
 0xca4   : > { %2821 = vmatpush3.bf16.msra.mxu1 %v3004_v43 }
 0xca5   : > { %2826 = vmatprep.subr.mxu1 %v3149_v1 }
 0xd30   : > { %v1125_v37 = vpop.xlane.xlu1 %1124 }
 0xd31   : > { %v1126_v38 = vmul.f32 0.03125, %v1125_v37 }
 0xd33   : > { %v1127_v39 = vsub.f32 %v1118_v29, %v1126_v38 }
 0xd35   : > { %v1128_v40 = vmul.f32 %v1127_v39, %v1127_v39 }
 0xd37   : > { %v1129_v15 = vsel %vm313_vm3, %v1128_v40, 0.0  ;;  %v3005_v40 = vld [vmem:[#allocation2 + $0x100] sm:$0xff]  }
 0xd38   : > { %1130 = vadd.xlane.f32.xlu1 %v1129_v15  ;;  %v3006_v15 = vld [vmem:[#allocation2 + $0x108] sm:$0xff]  }
 0xd72   : > { %v3393_v44 = vpop.f32.mrb[16].mxu1 }
 0xd73   : > { %v2796_v45 = vpop.f32.mrb[17].mxu1 }
 0xd74   : > { %v983_v46 = vpop.f32.mrb[18].mxu1  ;;  %v2575_v45 = vld [vmem:[#allocation4 + $0x28] ss:$0 sm:$0xff] }
 0xd75   : > { %v2797_v47 = vpop.f32.mrb[19].mxu1  ;;  %v981_v46 = vadd.f32 %v2575_v45, %v3393_v44 }
 0xd77   : > { %v986_v47 = vadd.f32 %v981_v46, %v3362_v56 }
 0xdc5   : > { %v1131_v48 = vpop.xlane.xlu1 %1130 }
 0xdc6   : > { %v1132_v42 = vmul.f32 0.03125, %v1131_v48  ;;  %v987_v48 = vsel %vm313_vm3, %v986_v47, 0.0 }
 0xdc8   : > { %v1133_v49 = vadd.f32 1e-12, %v1132_v42 }
 0xdca   : > { %3035 = vrsqrt.f32 %v1133_v49 }
 0xdd4   : > { %v3036_v51 = vpop.eup %3035 }
 0xdd5   : > { %v1135_v52 = vmul.f32 %v3036_v51, %v1127_v39 }
 0xdd7   : > { %v1140_v54 = vmul.f32 %v1139_v2, %v1135_v52  ;;  %v2602_v52 = vld [vmem:[#allocation4 + $0x38] ss:$0 sm:$0xff] }
 0xdd9   : > { %v3398_v55 = vadd.f32 %v1144_v53, %v1140_v54 }
 0xddb   : > { %v1146_v57 = vpack.c.bf16 %v3398_v55, %v3398_v55 }
 0xddd   : > { %2823 = vmatmul.mubr.msk.bf16.vlgmr.msra.gmra.mrb[20].mxu1 %vm313_vm3, %v1146_v57 }
 0xdde   : > { %2828 = vmatprep.mubr.msk.f32.mxu1 %vm3150_vm0, %v3149_v1 }
 0xeb0   : > { %v1205_v59 = vpop.f32.mrb[20].mxu1 }
 0xeb1   : > { %v1206_v60 = vadd.f32 %v2592_v58, %v1205_v59  ;;  %v2824_v61 = vpop.f32.mrb[21].mxu1 }
 0xeb2   : > { %v1208_v62 = vpop.f32.mrb[22].mxu1 }
 0xeb3   : > { %1215 = vrot.lane.b32.xlu1 %v1206_v60, %s3153_s24  ;;  %v2825_v63 = vpop.f32.mrb[23].mxu1 }
 0xeb4   : > { %v3007_v63 = vld [vmem:[#allocation2 + $0x120] sm:$0xff]  }
 0xf25   : > { %v1216_v0 = vpop.permute.xlu1 %1215 }
 0xf26   : > { %2827 = vmatpush3.xpose.msk.msra.mxu1 %vm406_vm4, %v1216_v0  ;;  %v3008_v0 = vld [vmem:[#allocation2 + $0x128] sm:$0xff]  }
 0xf27   : > { %2831 = vmatprep.subr.mxu1 %v3149_v1 }
 0xf29   : > { %2829 = vmatmul.mubr.msk.f32.vlgmr.msra.gmra.mrb[24].mxu1 %vm406_vm4, %v1206_v60 }
 0xf2a   : > { %2833 = vmatprep.mubr.msk.f32.mxu1 %vm3150_vm0, %v3149_v1 }
 0xffc   : > { %v1287_v3 = vpop.f32.mrb[24].mxu1 }
 0xffd   : > { %v1291_v4 = vmul.f32 0.25, %v1287_v3  ;;  %v2830_v5 = vpop.f32.mrb[25].mxu1 }
 0xfff   : > { %v1292_v6 = vsel %vm1213_vm9, %v1291_v4, -1e+09 }
0x1000   : > { %v1293_v7 = vsel %vm482_vm5, %v1292_v6, -inf }
0x1001   : > { %1294 = vmax.xlane.f32.xlu1 %v1293_v7 }
0x1012   : > { %1382 = vrot.lane.b32.xlu1 %v1206_v60, %s3154_s25 }
0x1016   : > { %1380 = vrot.lane.b32.xlu1 %v1206_v60, %s3155_s26 }
0x108e   : > { %v1295_v8 = vpop.xlane.xlu1 %1294 }
0x108f   : > { %v1296_v14 = vsub.f32 %v1292_v6, %v1295_v8 }
0x1091   : > { %v1297_v9 = vmul.f32 1.442695, %v1296_v14 }
0x1092   : > { %v1383_v18 = vpop.permute.xlu1 %1382 }
0x1093   : > { %3037 = vpow2.f32 %v1297_v9  ;;  %v1002_v9 = vsub.s32 2, %v3303_v33 }
0x1096   : > { %v1381_v20 = vpop.permute.xlu1 %1380 }
0x109d   : > { %v3038_v10 = vpop.eup %3037 }
0x109e   : > { %v1299_v11 = vsel %vm482_vm5, %v3038_v10, 0.0 }
0x109f   : > { %1300 = vadd.xlane.f32.xlu0 %v1299_v11 }
0x10b5   : > { %1304 = vrot.lane.b32.xlu0 %v1206_v60, %s3152_s23 }
0x112c   : > { %v1301_v13 = vpop.xlane.xlu0 %1300 }
0x112d   : > { %3039 = vrcp.f32 %v1301_v13 }
0x1130   : > { %v1305_v16 = vpop.permute.xlu0 %1304 }
0x1131   : > { %2832 = vmatpush3.msra.mxu1 %v1305_v16  ;;  %v1008_v16 = vrot.slane %v3308_v36, %v1002_v9 }
0x1132   : > { %2836 = vmatprep.subr.mxu1 %v3149_v1 }
0x1137   : > { %v3040_v17 = vpop.eup %3039 }
0x1138   : > { %v1303_v19 = vmul.f32 %v3040_v17, %v3038_v10  ;;  %v1003_v10 = vrot.slane %v3306_v35, %v1002_v9 }
0x113a   : > { %2834 = vmatmul.mubr.msk.f32.vlgmr.msra.gmra.mrb[26].mxu1 %vm482_vm5, %v1303_v19 }
0x113b   : > { %2837 = vmatpush3.xpose.msk.msra.mxu1 %vm406_vm4, %v1383_v18  ;;  %2838 = vmatprep.mubr.msk.f32.mxu1 %vm3150_vm0, %v3149_v1 }
0x113c   : > { %2846 = vmatprep.subr.bf16.mxu1 %v3149_v1 }
0x113e   : > { %2839 = vmatmul.mubr.msk.f32.vlgmr.msra.gmra.mrb[28].mxu1 %vm406_vm4, %v1381_v20  ;;  %v3009_v20 = vld [vmem:[#allocation2 + $0x110] sm:$0xff]  }
0x113f   : > { %2850 = vmatprep.mubr.msk.bf16.mxu1 %vm3150_vm0, %v3149_v1  ;;  %2847 = vmatpush3.bf16.msra.mxu1 %v3005_v40 }
0x1140   : > { %2848 = vmatprep.subr.bf16.mxu1 %v3149_v1 }
0x1143   : > { %2849 = vmatpush3.bf16.msra.mxu1 %v3006_v15 }
0x1144   : > { %2862 = vmatprep.subr.bf16.mxu1 %v3149_v1 }
0x120d   : > { %v1376_v21 = vpop.f32.mrb[26].mxu1 }
0x120e   : > { %v2835_v22 = vpop.f32.mrb[27].mxu1 }
0x1211   : > { %v1454_v23 = vpop.f32.mrb[28].mxu1 }
0x1212   : > { %v1458_v24 = vmul.f32 0.25, %v1454_v23  ;;  %v2840_v25 = vpop.f32.mrb[29].mxu1 }
0x1213   : > { %v1633_v25 = vsub.s32 4, %v3303_v33 }
0x1214   : > { %v1459_v26 = vsel %vm1213_vm9, %v1458_v24, -1e+09 }
0x1215   : > { %v1460_v27 = vsel %vm482_vm5, %v1459_v26, -inf }
0x1216   : > { %1461 = vmax.xlane.f32.xlu1 %v1460_v27 }
0x12a3   : > { %v1462_v28 = vpop.xlane.xlu1 %1461 }
0x12a4   : > { %v1463_v29 = vsub.f32 %v1459_v26, %v1462_v28  ;;  %v1634_v26 = vrot.slane %v3306_v35, %v1633_v25 }
0x12a6   : > { %v1464_v30 = vmul.f32 1.442695, %v1463_v29  ;;  %v1639_v29 = vrot.slane %v3308_v36, %v1633_v25 }
0x12a8   : > { %3041 = vpow2.f32 %v1464_v30 }
0x12b2   : > { %v3042_v31 = vpop.eup %3041 }
0x12b3   : > { %v1466_v32 = vsel %vm482_vm5, %v3042_v31, 0.0 }
0x12b4   : > { %1467 = vadd.xlane.f32.xlu0 %v1466_v32 }
0x12ca   : > { %1471 = vrot.lane.b32.xlu0 %v1206_v60, %s3156_s27 }
0x1341   : > { %v1468_v34 = vpop.xlane.xlu0 %1467 }
0x1342   : > { %3043 = vrcp.f32 %v1468_v34  ;;  %v2610_v34 = vld [vmem:[#allocation4 + $0x48] ss:$0 sm:$0xff] }
0x1345   : > { %v1472_v37 = vpop.permute.xlu0 %1471 }
0x1346   : > { %2842 = vmatpush3.msra.mxu0 %v1472_v37 }
0x1347   : > { %2854 = vmatprep.subr.bf16.mxu0 %v3149_v1 }
0x134c   : > { %v3044_v38 = vpop.eup %3043 }
0x134d   : > { %v1470_v39 = vmul.f32 %v3044_v38, %v3042_v31 }
0x134f   : > { %2844 = vmatmul.mubr.msk.f32.vlgmr.msra.gmra.mrb[12].mxu0 %vm482_vm5, %v1470_v39 }
0x1350   : > { %2858 = vmatprep.mubr.msk.bf16.mxu0 %vm3150_vm0, %v3149_v1  ;;  %2855 = vmatpush3.bf16.msra.mxu0 %v3009_v20 }
0x1351   : > { %2856 = vmatprep.subr.bf16.mxu0 %v3149_v1 }
0x1422   : > { %v1543_v41 = vpop.f32.mrb[12].mxu0 }
0x1423   : > { %1548 = vrot.lane.b32.xlu1 %v1543_v41, %s3157_s28  ;;  %v2845_v43 = vpop.f32.mrb[13].mxu0 }
0x1424   : > { %v2606_v43 = vld [vmem:[#allocation4 + $0x40] ss:$0 sm:$0xff] }
0x1447   : > { %988 = vadd.xlane.f32.xlu1 %v987_v48 }
0x1495   : > { %v1549_v42 = vpop.permute.xlu1 %1548 }
0x1496   : > { %v1551_v49 = vsel %vm406_vm4, %v1376_v21, %v1549_v42  ;;  %v3010_v21 = vld [vmem:[#allocation2 + $0x118] sm:$0xff]  }
0x1497   : > { %v1552_v50 = vpack.c.bf16 %v1551_v49, %v1551_v49  ;;  %2857 = vmatpush3.bf16.msra.mxu0 %v3010_v21 }
0x1498   : > { %2870 = vmatprep.subr.mxu0 %v3149_v1 }
0x1499   : > { %2851 = vmatmul.mubr.msk.bf16.vlgmr.msra.gmra.mrb[32].mxu1 %vm313_vm3, %v1552_v50 }
0x149a   : > { %2866 = vmatprep.mubr.msk.bf16.mxu1 %vm3150_vm0, %v3149_v1  ;;  %2863 = vmatpush3.bf16.msra.mxu1 %v3007_v63 }
0x149b   : > { %2864 = vmatprep.subr.bf16.mxu1 %v3149_v1 }
0x149e   : > { %2865 = vmatpush3.bf16.msra.mxu1 %v3008_v0 }
0x149f   : > { %2880 = vmatprep.subr.mxu1 %v3149_v1 }
0x14d4   : > { %v989_v2 = vpop.xlane.xlu1 %988 }
0x14d5   : > { %v990_v51 = vmul.f32 0.03125, %v989_v2 }
0x14d7   : > { %v991_v54 = vsub.f32 %v986_v47, %v990_v51 }
0x14d9   : > { %v992_v61 = vmul.f32 %v991_v54, %v991_v54 }
0x14db   : > { %v993_v62 = vsel %vm313_vm3, %v992_v61, 0.0 }
0x156c   : > { %v1611_v53 = vpop.f32.mrb[32].mxu1 }
0x156d   : > { %v1612_v44 = vadd.f32 %v2602_v52, %v1611_v53  ;;  %v2852_v57 = vpop.f32.mrb[33].mxu1 }
0x156e   : > { %v1614_v56 = vpop.f32.mrb[34].mxu1 }
0x156f   : > { %v2853_v58 = vpop.f32.mrb[35].mxu1  ;;  %v1617_v59 = vadd.f32 %v1612_v44, %v3398_v55 }
0x1571   : > { %v1618_v60 = vsel %vm313_vm3, %v1617_v59, 0.0 }
0x1572   : > { %1619 = vadd.xlane.f32.xlu0 %v1618_v60 }
0x1576   : > { %994 = vadd.xlane.f32.xlu0 %v993_v62 }
0x15ff   : > { %v1620_v3 = vpop.xlane.xlu0 %1619 }
0x1600   : > { %v1621_v4 = vmul.f32 0.03125, %v1620_v3 }
0x1602   : > { %v1622_v5 = vsub.f32 %v1617_v59, %v1621_v4 }
0x1603   : > { %v995_v6 = vpop.xlane.xlu0 %994 }
0x1604   : > { %v996_v55 = vmul.f32 0.03125, %v995_v6  ;;  %v1623_v7 = vmul.f32 %v1622_v5, %v1622_v5 }
0x1606   : > { %v997_v8 = vadd.f32 1e-12, %v996_v55  ;;  %v1624_v14 = vsel %vm313_vm3, %v1623_v7, 0.0 }
0x1607   : > { %1625 = vadd.xlane.f32.xlu0 %v1624_v14 }
0x1608   : > { %3045 = vrsqrt.f32 %v997_v8 }
0x1612   : > { %v3046_v11 = vpop.eup %3045 }
0x1613   : > { %v999_v13 = vmul.f32 %v3046_v11, %v991_v54  ;;  %v3011_v11 = vld [vmem:[#allocation2 + $0x130] sm:$0xff]  }
0x1615   : > { %v1004_v17 = vmul.f32 %v1003_v10, %v999_v13 }
0x1617   : > { %v1009_v18 = vadd.f32 %v1008_v16, %v1004_v17  ;;  %v3012_v17 = vld [vmem:[#allocation2 + $0x138] sm:$0xff]  }
0x1619   : > { %v1706_v19 = vpack.c.bf16 %v1009_v18, %v1009_v18 }
0x161b   : > { %2867 = vmatmul.mubr.msk.bf16.vlgmr.msra.gmra.mrb[36].mxu1 %vm313_vm3, %v1706_v19 }
0x161c   : > { %2882 = vmatprep.mubr.msk.f32.mxu1 %vm3150_vm0, %v3149_v1 }
0x1694   : > { %v1626_v22 = vpop.xlane.xlu0 %1625 }
0x1695   : > { %v1627_v23 = vmul.f32 0.03125, %v1626_v22 }
0x1697   : > { %v1628_v24 = vadd.f32 1e-12, %v1627_v23  ;;  %v2620_v23 = vld [vmem:[#allocation4 + $0x50] ss:$0 sm:$0xff] }
0x1699   : > { %3047 = vrsqrt.f32 %v1628_v24 }
0x16a3   : > { %v3048_v27 = vpop.eup %3047 }
0x16a4   : > { %v1630_v28 = vmul.f32 %v3048_v27, %v1622_v5 }
0x16a6   : > { %v1635_v30 = vmul.f32 %v1634_v26, %v1630_v28 }
0x16a8   : > { %v3467_v31 = vadd.f32 %v1639_v29, %v1635_v30 }
0x16aa   : > { %v1641_v32 = vpack.c.bf16 %v3467_v31, %v3467_v31 }
0x16ac   : > { %2859 = vmatmul.mubr.msk.bf16.vlgmr.msra.gmra.mrb[16].mxu0 %vm313_vm3, %v1641_v32 }
0x16ad   : > { %2872 = vmatprep.mubr.msk.f32.mxu0 %vm3150_vm0, %v3149_v1 }
0x16ee   : > { %v1765_v37 = vpop.f32.mrb[36].mxu1 }
0x16ef   : > { %v1766_v38 = vadd.f32 %v2610_v34, %v1765_v37  ;;  %v2868_v39 = vpop.f32.mrb[37].mxu1 }
0x16f0   : > { %v1768_v40 = vpop.f32.mrb[38].mxu1 }
0x16f1   : > { %1937 = vrot.lane.b32.xlu1 %v1766_v38, %s3155_s26  ;;  %v2869_v15 = vpop.f32.mrb[39].mxu1  ;;  %2871 = vmatpush3.xpose.msk.msra.mxu0 %vm406_vm4, %v1766_v38  ;;  %v3013_v40 = vld [vmem:[#allocation2 + $0x140] sm:$0xff]  }
0x16f2   : > { %2875 = vmatprep.subr.mxu0 %v3149_v1  ;;  %v3014_v15 = vld [vmem:[#allocation2 + $0x148] sm:$0xff]  }
0x1763   : > { %v1938_v41 = vpop.permute.xlu1 %1937 }
0x1764   : > { %2881 = vmatpush3.xpose.msk.msra.mxu1 %vm406_vm4, %v1938_v41 }
0x1765   : > { %2890 = vmatprep.subr.bf16.mxu1 %v3149_v1 }
0x177f   : > { %v1700_v45 = vpop.f32.mrb[16].mxu0 }
0x1780   : > { %v1701_v46 = vadd.f32 %v2606_v43, %v1700_v45  ;;  %v2860_v47 = vpop.f32.mrb[17].mxu0  ;;  %v2187_v45 = vsub.s32 5, %v3303_v33 }
0x1781   : > { %v1703_v48 = vpop.f32.mrb[18].mxu0 }
0x1782   : > { %1935 = vrot.lane.b32.xlu0 %v1701_v46, %s3155_s26  ;;  %v2861_v42 = vpop.f32.mrb[19].mxu0  ;;  %2873 = vmatmul.mubr.msk.f32.vlgmr.msra.gmra.mrb[14].mxu0 %vm406_vm4, %v1701_v46  ;;  %v2188_v46 = vrot.slane %v3306_v35, %v2187_v45  ;;  %v3017_v35 = vld [vmem:[#allocation2 + $0x160] sm:$0xff]  }
0x1783   : > { %2877 = vmatprep.mubr.msk.f32.mxu0 %vm3150_vm0, %v3149_v1  ;;  %v2193_v42 = vrot.slane %v3308_v36, %v2187_v45  ;;  %v3018_v36 = vld [vmem:[#allocation2 + $0x168] sm:$0xff]  }
0x17f4   : > { %v1936_v49 = vpop.permute.xlu0 %1935 }
0x17f5   : > { %2883 = vmatmul.mubr.msk.f32.vlgmr.msra.gmra.mrb[30].mxu1 %vm406_vm4, %v1936_v49 }
0x17f6   : > { %2894 = vmatprep.mubr.msk.bf16.mxu1 %vm3150_vm0, %v3149_v1  ;;  %2891 = vmatpush3.bf16.msra.mxu1 %v3011_v11 }
0x17f7   : > { %2892 = vmatprep.subr.bf16.mxu1 %v3149_v1 }
0x17fa   : > { %2893 = vmatpush3.bf16.msra.mxu1 %v3012_v17 }
0x17fb   : > { %2906 = vmatprep.subr.bf16.mxu1 %v3149_v1 }
0x1855   : > { %v1843_v50 = vpop.f32.mrb[14].mxu0 }
0x1856   : > { %v1847_v2 = vmul.f32 0.25, %v1843_v50  ;;  %v2874_v51 = vpop.f32.mrb[15].mxu0 }
0x1857   : > { %v3015_v51 = vld [vmem:[#allocation2 + $0x150] sm:$0xff]  }
0x1858   : > { %v1848_v52 = vsel %vm482_vm5, %v1847_v2, -inf }
0x1859   : > { %1849 = vmax.xlane.f32.xlu1 %v1848_v52  ;;  %v3016_v52 = vld [vmem:[#allocation2 + $0x158] sm:$0xff]  }
0x18c8   : > { %v2009_v53 = vpop.f32.mrb[30].mxu1 }
0x18c9   : > { %v2013_v54 = vmul.f32 0.25, %v2009_v53  ;;  %v2884_v44 = vpop.f32.mrb[31].mxu1  ;;  %v2624_v53 = vld [vmem:[#allocation4 + $0x58] ss:$0 sm:$0xff] }
0x18cb   : > { %v2014_v57 = vsel %vm482_vm5, %v2013_v54, -inf }
0x18cc   : > { %2015 = vmax.xlane.f32.xlu0 %v2014_v57 }
0x18e6   : > { %v1850_v56 = vpop.xlane.xlu1 %1849 }
0x18e7   : > { %v1851_v58 = vsub.f32 %v1847_v2, %v1850_v56 }
0x18e9   : > { %v1852_v59 = vmul.f32 1.442695, %v1851_v58 }
0x18eb   : > { %3049 = vpow2.f32 %v1852_v59 }
0x18f5   : > { %v3050_v60 = vpop.eup %3049 }
0x18f6   : > { %v1854_v61 = vsel %vm482_vm5, %v3050_v60, 0.0 }
0x18f7   : > { %1855 = vadd.xlane.f32.xlu1 %v1854_v61 }
0x1908   : > { %1859 = vrot.lane.b32.xlu1 %v1766_v38, %s3153_s24 }
0x1959   : > { %v2016_v62 = vpop.xlane.xlu0 %2015 }
0x195a   : > { %v2017_v63 = vsub.f32 %v2013_v54, %v2016_v62 }
0x195c   : > { %v2018_v0 = vmul.f32 1.442695, %v2017_v63 }
0x195e   : > { %3051 = vpow2.f32 %v2018_v0 }
0x1968   : > { %v3052_v3 = vpop.eup %3051 }
0x1969   : > { %v2020_v4 = vsel %vm482_vm5, %v3052_v3, 0.0 }
0x196a   : > { %2021 = vadd.xlane.f32.xlu0 %v2020_v4 }
0x1980   : > { %2025 = vrot.lane.b32.xlu0 %v1766_v38, %s3154_s25 }
0x1984   : > { %v1856_v5 = vpop.xlane.xlu1 %1855 }
0x1985   : > { %3053 = vrcp.f32 %v1856_v5 }
0x1988   : > { %v1860_v6 = vpop.permute.xlu1 %1859 }
0x1989   : > { %2876 = vmatpush3.msra.mxu0 %v1860_v6 }
0x198a   : > { %2885 = vmatprep.subr.mxu0 %v3149_v1 }
0x198f   : > { %v3054_v55 = vpop.eup %3053 }
0x1990   : > { %v1858_v7 = vmul.f32 %v3054_v55, %v3050_v60  ;;  %v2628_v55 = vld [vmem:[#allocation4 + $0x60] ss:$0 sm:$0xff] }
0x1992   : > { %2878 = vmatmul.mubr.msk.f32.vlgmr.msra.gmra.mrb[20].mxu0 %vm482_vm5, %v1858_v7 }
0x1993   : > { %2887 = vmatprep.mubr.msk.f32.mxu0 %vm3150_vm0, %v3149_v1 }
0x19f7   : > { %v2022_v8 = vpop.xlane.xlu0 %2021 }
0x19f8   : > { %3055 = vrcp.f32 %v2022_v8 }
0x19fb   : > { %v2026_v14 = vpop.permute.xlu0 %2025 }
0x19fc   : > { %2886 = vmatpush3.msra.mxu0 %v2026_v14 }
0x19fd   : > { %2898 = vmatprep.subr.bf16.mxu0 %v3149_v1 }
0x1a02   : > { %v3056_v9 = vpop.eup %3055 }
0x1a03   : > { %v2024_v10 = vmul.f32 %v3056_v9, %v3052_v3 }
0x1a05   : > { %2888 = vmatmul.mubr.msk.f32.vlgmr.msra.gmra.mrb[22].mxu0 %vm482_vm5, %v2024_v10 }
0x1a06   : > { %2902 = vmatprep.mubr.msk.bf16.mxu0 %vm3150_vm0, %v3149_v1  ;;  %2899 = vmatpush3.bf16.msra.mxu0 %v3013_v40 }
0x1a07   : > { %2900 = vmatprep.subr.bf16.mxu0 %v3149_v1 }
0x1a0a   : > { %2901 = vmatpush3.bf16.msra.mxu0 %v3014_v15 }
0x1a0b   : > { %2918 = vmatprep.subr.bf16.mxu0 %v3149_v1 }
0x1a65   : > { %v1931_v13 = vpop.f32.mrb[20].mxu0 }
0x1a66   : > { %v2879_v16 = vpop.f32.mrb[21].mxu0 }
0x1ad8   : > { %v2097_v18 = vpop.f32.mrb[22].mxu0 }
0x1ad9   : > { %2102 = vrot.lane.b32.xlu1 %v2097_v18, %s3157_s28  ;;  %v2889_v19 = vpop.f32.mrb[23].mxu0 }
0x1b4b   : > { %v2103_v20 = vpop.permute.xlu1 %2102 }
0x1b4c   : > { %v2105_v21 = vsel %vm406_vm4, %v1931_v13, %v2103_v20 }
0x1b4d   : > { %v2106_v22 = vpack.c.bf16 %v2105_v21, %v2105_v21  ;;  %v3019_v21 = vld [vmem:[#allocation2 + $0x170] sm:$0xff]  }
0x1b4f   : > { %2895 = vmatmul.mubr.msk.bf16.vlgmr.msra.gmra.mrb[40].mxu1 %vm313_vm3, %v2106_v22  ;;  %v3020_v22 = vld [vmem:[#allocation2 + $0x178] sm:$0xff]  }
0x1b50   : > { %2914 = vmatprep.mubr.msk.bf16.mxu1 %vm3150_vm0, %v3149_v1  ;;  %2907 = vmatpush3.bf16.msra.mxu1 %v3015_v51 }
0x1b51   : > { %2908 = vmatprep.subr.bf16.mxu1 %v3149_v1 }
0x1b54   : > { %2909 = vmatpush3.bf16.msra.mxu1 %v3016_v52 }
0x1b55   : > { %2910 = vmatprep.subr.bf16.mxu1 %v3149_v1 }
0x1b58   : > { %2911 = vmatpush3.bf16.msra.mxu1 %v3017_v35 }
0x1b59   : > { %2912 = vmatprep.subr.bf16.mxu1 %v3149_v1 }
0x1b5c   : > { %2913 = vmatpush3.bf16.msra.mxu1 %v3018_v36 }
0x1c22   : > { %v2165_v24 = vpop.f32.mrb[40].mxu1 }
0x1c23   : > { %v2166_v25 = vadd.f32 %v2620_v23, %v2165_v24  ;;  %v2896_v26 = vpop.f32.mrb[41].mxu1  ;;  %v3159_v23 = vmov 2   ;;  %v3067_v24 = vld [vmem:[%s3272_s22] sm:$0xff] }
0x1c24   : > { %v2168_v27 = vpop.f32.mrb[42].mxu1  ;;  %2975 = vset.pattern.permute.xlu1 %v3159_v23  ;;  %2976 = vset.pattern.permute.xlu0 %v3159_v23 }
0x1c25   : > { %v2897_v28 = vpop.f32.mrb[43].mxu1  ;;  %v2171_v29 = vadd.f32 %v2166_v25, %v3467_v31 }
0x1c26   : > { %v2366_v28 = vsub.s32 6, %v3303_v33 }
0x1c27   : > { %v2172_v30 = vsel %vm313_vm3, %v2171_v29, 0.0 }
0x1c28   : > { %2173 = vadd.xlane.f32.xlu1 %v2172_v30 }
0x1cb5   : > { %v2174_v32 = vpop.xlane.xlu1 %2173 }
0x1cb6   : > { %v2175_v34 = vmul.f32 0.03125, %v2174_v32 }
0x1cb8   : > { %v2176_v37 = vsub.f32 %v2171_v29, %v2175_v34  ;;  %v3068_v29 = vld [vmem:[#allocation4] sm:$0xff] }
0x1cb9   : > { %v2367_v30 = vrot.slane %v3068_v29, %v2366_v28 }
0x1cba   : > { %v2177_v38 = vmul.f32 %v2176_v37, %v2176_v37 }
0x1cbc   : > { %v2178_v39 = vsel %vm313_vm3, %v2177_v38, 0.0 }
0x1cbd   : > { %2179 = vadd.xlane.f32.xlu0 %v2178_v39 }
0x1d4a   : > { %v2180_v41 = vpop.xlane.xlu0 %2179 }
0x1d4b   : > { %v2181_v31 = vmul.f32 0.03125, %v2180_v41 }
0x1d4d   : > { %v2182_v43 = vadd.f32 1e-12, %v2181_v31 }
0x1d4f   : > { %3057 = vrsqrt.f32 %v2182_v43 }
0x1d59   : > { %v3058_v47 = vpop.eup %3057 }
0x1d5a   : > { %v2184_v48 = vmul.f32 %v3058_v47, %v2176_v37  ;;  %v3069_v37 = vld [vmem:[#allocation4 + $0x8] sm:$0xff] }
0x1d5b   : > { %v2372_v38 = vrot.slane %v3069_v37, %v2366_v28 }
0x1d5c   : > { %v2189_v49 = vmul.f32 %v2188_v46, %v2184_v48 }
0x1d5e   : > { %v2194_v50 = vadd.f32 %v2193_v42, %v2189_v49 }
0x1d60   : > { %v2195_v2 = vpack.c.bf16 %v2194_v50, %v2194_v50 }
0x1d62   : > { %2903 = vmatmul.mubr.msk.bf16.vlgmr.msra.gmra.mrb[24].mxu0 %vm313_vm3, %v2195_v2 }
0x1d63   : > { %2922 = vmatprep.mubr.msk.bf16.mxu0 %vm3150_vm0, %v3149_v1  ;;  %2919 = vmatpush3.bf16.msra.mxu0 %v3019_v21 }
0x1d64   : > { %2920 = vmatprep.subr.bf16.mxu0 %v3149_v1 }
0x1d67   : > { %2921 = vmatpush3.bf16.msra.mxu0 %v3020_v22 }
0x1e35   : > { %v2254_v54 = vpop.f32.mrb[24].mxu0 }
0x1e36   : > { %v2255_v44 = vadd.f32 %v2624_v53, %v2254_v54  ;;  %v2904_v57 = vpop.f32.mrb[25].mxu0 }
0x1e37   : > { %v2257_v56 = vpop.f32.mrb[26].mxu0 }
0x1e38   : > { %v2260_v58 = vmul.f32 %v2255_v44, %v2255_v44  ;;  %v2905_v59 = vpop.f32.mrb[27].mxu0 }
0x1e3a   : > { %v2261_v60 = vmul.f32 %v2260_v58, %v2255_v44 }
0x1e3c   : > { %v2262_v61 = vmul.f32 0.044715, %v2261_v60 }
0x1e3e   : > { %v2263_v62 = vadd.f32 %v2262_v61, %v2255_v44 }
0x1e40   : > { %v2264_v63 = vmul.f32 0.7978846, %v2263_v62 }
0x1e42   : > { %3059 = vtanh.f32 %v2264_v63 }
0x1e4c   : > { %v3060_v0 = vpop.eup %3059 }
0x1e4d   : > { %v2266_v3 = vadd.f32 1.0, %v3060_v0 }
0x1e4f   : > { %v2267_v4 = vmul.f32 0.5, %v2266_v3 }
0x1e51   : > { %v2268_v5 = vmul.f32 %v2267_v4, %v2255_v44 }
0x1e53   : > { %v2269_v6 = vpack.c.bf16 %v2268_v5, %v2268_v5 }
0x1e55   : > { %2915 = vmatmul.mubr.msk.bf16.vlgmr.msra.gmra.mrb[44].mxu1 %vm942_vm8, %v2269_v6 }
0x1f28   : > { %v2344_v7 = vpop.f32.mrb[44].mxu1 }
0x1f29   : > { %v2345_v8 = vadd.f32 %v2628_v55, %v2344_v7  ;;  %v2916_v14 = vpop.f32.mrb[45].mxu1 }
0x1f2a   : > { %v2347_v9 = vpop.f32.mrb[46].mxu1 }
0x1f2b   : > { %v2917_v10 = vpop.f32.mrb[47].mxu1  ;;  %v2350_v11 = vadd.f32 %v2345_v8, %v2194_v50 }
0x1f2d   : > { %v2351_v13 = vsel %vm313_vm3, %v2350_v11, 0.0 }
0x1f2e   : > { %2352 = vadd.xlane.f32.xlu0 %v2351_v13 }
0x1fbb   : > { %v2353_v16 = vpop.xlane.xlu0 %2352 }
0x1fbc   : > { %v2354_v17 = vmul.f32 0.03125, %v2353_v16 }
0x1fbe   : > { %v2355_v18 = vsub.f32 %v2350_v11, %v2354_v17 }
0x1fc0   : > { %v2356_v19 = vmul.f32 %v2355_v18, %v2355_v18 }
0x1fc2   : > { %v2357_v20 = vsel %vm313_vm3, %v2356_v19, 0.0 }
0x1fc3   : > { %2358 = vadd.xlane.f32.xlu1 %v2357_v20 }
0x1fd4   : > { %2445 = vperm.xlu1 %2975, %v3067_v24  }
0x2050   : > { %v2359_v25 = vpop.xlane.xlu1 %2358 }
0x2051   : > { %v2360_v26 = vmul.f32 0.03125, %v2359_v25 }
0x2053   : > { %v2361_v27 = vadd.f32 1e-12, %v2360_v26 }
0x2054   : > { %v2446_v33 = vpop.permute.xlu1 %2445 }
0x2055   : > { %3061 = vrsqrt.f32 %v2361_v27  ;;  %vm2447_vm10 = vcmp.eq.s32.totalorder %v3290_v12, %v2446_v33 }
0x2056   : > { %v2637_v49 = vsel %vm2447_vm10, 1.0, %v3149_v1 }
0x205f   : > { %v3062_v32 = vpop.eup %3061 }
0x2060   : > { %v2363_v34 = vmul.f32 %v3062_v32, %v2355_v18 }
0x2062   : > { %v2368_v39 = vmul.f32 %v2367_v30, %v2363_v34 }
0x2064   : > { %v2373_v40 = vadd.f32 %v2372_v38, %v2368_v39 }
0x2066   : > { %v2374_v15 = vpack.c.bf16 %v2373_v40, %v2373_v40 }
0x2068   : > { %2923 = vmatmul.mubr.msk.bf16.vlgmr.msra.gmra.mrb[28].mxu0 %vm313_vm3, %v2374_v15 }
0x213b   : > { %v2428_v41 = vpop.f32.mrb[28].mxu0 }
0x213c   : > { %2434 = vmax.xlane.f32.xlu0 %v2428_v41  ;;  %v2924_v31 = vpop.f32.mrb[29].mxu0  ;;  %v2450_v50 = vmul.f32 %v2637_v49, %v2428_v41 }
0x213d   : > { %v2431_v43 = vpop.f32.mrb[30].mxu0 }
0x213e   : > { %v2925_v45 = vpop.f32.mrb[31].mxu0 }
0x21c9   : > { %v2435_v46 = vpop.xlane.xlu0 %2434 }
0x21ca   : > { %v2436_v47 = vsub.f32 %v2428_v41, %v2435_v46 }
0x21cc   : > { %v2437_v48 = vmul.f32 1.442695, %v2436_v47 }
0x21ce   : > { %3063 = vpow2.f32 %v2437_v48 }
0x21d8   : > { %v3064_v42 = vpop.eup %3063 }
0x21d9   : > { %2439 = vadd.xlane.f32.xlu0 %v3064_v42 }
0x21dd   : > { %2451 = vadd.xlane.f32.xlu0 %v2450_v50 }
0x2266   : > { %v2440_v2 = vpop.xlane.xlu0 %2439 }
0x2267   : > { %3065 = vlog2.f32 %v2440_v2 }
0x226a   : > { %v2452_v36 = vpop.xlane.xlu0 %2451 }
0x2271   : > { %v3066_v51 = vpop.eup %3065 }
0x2272   : > { %v2442_v52 = vmul.f32 0.6931472, %v3066_v51 }
0x2274   : > { %v2443_v35 = vadd.f32 %v2442_v52, %v2435_v46 }
0x2276   : > { %v2453_v53 = vsub.f32 %v2443_v35, %v2452_v36 }
0x2278   : > { %v2455_v54 = vsel %vm2454_vm11, %v2453_v53, 0.0 }
0x2279   : > { %2456 = vadd.xlane.f32.xlu0 %v2455_v54 }
0x2306   : > { %v2457_v44 = vpop.xlane.xlu0 %2456 }
0x2307   : > { %v2458_v57 = vrot.slane %v2457_v44, 4 }
0x2309   : > { %v2459_v12 = vadd.f32 %v2458_v57, %v2457_v44 }
0x230b   : > { %v2460_v56 = vrot.slane %v2459_v12, 2 }
0x230d   : > { %v2461_v58 = vadd.f32 %v2460_v56, %v2459_v12 }
0x230f   : > { %v2462_v1 = vrot.slane %v2461_v58, 1 }
0x2311   : > { %v2463_v59 = vadd.f32 %v2462_v1, %v2461_v58 }
0x2313   : > { %2926 = vpush %v2463_v59 }
0x2344   : > { %s2927_s5 = spop %2926 }
0x2345   : > { %v2465_v60 = vstv %s2927_s5 }
0x2346   : > { %2466 = vst [vmem:[%s193_s4] sm:$0x1] %v2465_v60 }
0x2347 PF: > { %s15_s12 = sadd.s32 1, %s3140_s12  }
0x2348   : > { %p12_p5 = scmp.ge.s32.totalorder %s15_s12, 4  }
0x234a   :  { %14 = sbr.rel (!%p12_p5) target bundleno = 2 (0x2), region = 71 }
0x2351   :  { %2484 = vsyncpa [#allocation3], 1 }
0x2352   :  { %2486 = vsyncpa [#allocation3 + $0x1], 1 }
0x2353   :  { %2487 = vsyncpa [#allocation5], 1 }

</bundles_post_ra>
